<compile_context>
chip_gen: v5e
topology: v5e:2x2
jax: 0.10.0
libtpu: 0.0.40
codegen_flags: <defaults>
</compile_context>

<pallas_src>
import functools

import jax
import jax.numpy as jnp
from jax.experimental import pallas as pl
from jax.experimental.pallas import tpu as pltpu


def make_encoder_kernel(n_layers: int, seq_len: int, hidden: int, emb_dim: int,
                        vocab_size: int, *, bulk_gather: bool, use_bf16: bool):
    """Embedding gather + hoisted layer-0 projection + unrolled wavefront LSTM."""
    S, H, E, V = seq_len, hidden, emb_dim, vocab_size
    mxu_dtype = jnp.bfloat16 if use_bf16 else jnp.float32
    n_upper = n_layers - 1

    def kernel(*refs):
        ids_ref = refs[0]                       # bulk: VMEM int32 [S,1]; rows: SMEM int32 [S]
        emb_ref = refs[1]                       # bulk: VMEM [V,E];      rows: HBM (ANY) [V,E]
        w_ih0_ref, w_hh0_ref, b0_ref = refs[2], refs[3], refs[4]
        upper_refs = refs[5:5 + 2 * n_upper]    # per layer l>=1: (w_cat (2H,4H), bias (1,4H))
        h_out = refs[5 + 2 * n_upper]           # VMEM [L, H]
        c_out = refs[6 + 2 * n_upper]           # VMEM [L, H]
        if not bulk_gather:
            x_buf = refs[7 + 2 * n_upper]       # VMEM scratch [S, E]
            dma_sem = refs[8 + 2 * n_upper]     # DMA semaphores [S]

        # --- 1) Embedding gather.
        copies = []
        if not bulk_gather:
            # Fallback path (large vocab): per-row HBM->VMEM DMA gather.
            # Token ids are clamped in the wrapper, so no OOB reads here.
            for t in range(S):
                idx = ids_ref[t]
                cp = pltpu.make_async_copy(
                    emb_ref.at[pl.ds(idx, 1), :],
                    x_buf.at[pl.ds(t, 1), :],
                    dma_sem.at[t],
                )
                cp.start()
                copies.append(cp)

        # Hoist all DMA-independent work above any semaphore wait: weight loads,
        # bias loads and h/c zero-init proceed while gather DMAs are in flight.
        w_ih0 = w_ih0_ref[...]                                   # (E, 4H)  mxu_dtype
        w_hh0 = w_hh0_ref[...]                                   # (H, 4H)  mxu_dtype
        b0 = b0_ref[...]                                         # (1, 4H)  f32
        w_cat = [upper_refs[2 * i][...] for i in range(n_upper)]     # (2H, 4H) mxu_dtype
        b_up = [upper_refs[2 * i + 1][...] for i in range(n_upper)]  # (1, 4H)  f32
        h = [jnp.zeros((1, H), jnp.float32) for _ in range(n_layers)]
        c = [jnp.zeros((1, H), jnp.float32) for _ in range(n_layers)]

        if bulk_gather:
            # One-hot MXU gather: the whole (tiny) table is already in VMEM via a
            # single bulk DMA; x = one_hot(ids) @ table selects the S needed rows.
            # Out-of-range ids (pre-clamped in the wrapper anyway) would yield a
            # zero row rather than garbage.
            ids = ids_ref[...]                                       # (S, 1) int32
            col = jax.lax.broadcasted_iota(jnp.int32, (S, V), 1)     # (S, V)
            one_hot = (col == ids).astype(jnp.float32)
            x = jnp.dot(one_hot, emb_ref[...],
                        preferred_element_type=jnp.float32)          # (S, E) f32
        else:
            for cp in copies:
                cp.wait()
            x = x_buf[...]

        # TODO(synk): nn.Dropout(p) after the embedding is identity in eval mode;
        # training-mode dropout (pltpu.prng_* + mask) is not applied here.

        # --- 2) Layer-0 input projection for ALL timesteps in one MXU matmul,
        #        off the serial critical path: (S, E) @ (E, 4H) + b -> (S, 4H).
        pre0 = (
            jnp.dot(x.astype(mxu_dtype), w_ih0, preferred_element_type=jnp.float32)
            + b0
        )

        def cell(gates, h_prev, c_prev):
            # Full-width nonlinearities on the whole (1, 4H) vreg, then slice
            # (slices hit the XLU, which has slack here).
            sig = jax.nn.sigmoid(gates)
            th = jnp.tanh(gates)
            i_g = sig[:, 0:H]
            f_g = sig[:, H:2 * H]
            o_g = sig[:, 3 * H:4 * H]
            g_g = th[:, 2 * H:3 * H]
            c_new = f_g * c_prev + i_g * g_g
            h_new = o_g * jnp.tanh(c_new)
            return h_new, c_new

        # --- 3) Fully-unrolled software wavefront over time: layer l's step t
        #        consumes layer l-1's h for step t while it is still in vregs.
        #        For l >= 1 the two matmuls are fused into one (1,2H)@(2H,4H).
        for t in range(S):
            gates0 = pre0[t:t + 1, :] + jnp.dot(
                h[0].astype(mxu_dtype), w_hh0, preferred_element_type=jnp.float32)
            h[0], c[0] = cell(gates0, h[0], c[0])
            for l in range(1, n_layers):
                hcat = jnp.concatenate([h[l - 1], h[l]], axis=1).astype(mxu_dtype)
                gates = (
                    jnp.dot(hcat, w_cat[l - 1], preferred_element_type=jnp.float32)
                    + b_up[l - 1]
                )
                h[l], c[l] = cell(gates, h[l], c[l])

        for l in range(n_layers):
            h_out[pl.ds(l, 1), :] = h[l]
            c_out[pl.ds(l, 1), :] = c[l]

    return kernel


def encoder_forward(seq_ids, embedding, layer_params, hidden_size, *,
                    use_bf16=True, vmem_table_limit_bytes=8 << 20):
    """seq_ids: int32 [S]; embedding: [V, E]; layer_params: list of (w_ih_T, w_hh_T, b)."""
    n_layers = len(layer_params)
    S = seq_ids.shape[0]
    V, E = embedding.shape
    H = hidden_size
    mxu_dtype = jnp.bfloat16 if use_bf16 else jnp.float32

    # Layer 0 kept split (its input projection is hoisted over all timesteps);
    # layers >= 1 get [w_ih_T; w_hh_T] pre-stacked for the fused per-step matmul.
    w_ih0_t, w_hh0_t, b0 = layer_params[0]
    flat_weights = [w_ih0_t.astype(mxu_dtype), w_hh0_t.astype(mxu_dtype),
                    b0.astype(jnp.float32)]
    for (w_ih_t, w_hh_t, b) in layer_params[1:]:
        w_cat = jnp.concatenate([w_ih_t, w_hh_t], axis=0).astype(mxu_dtype)  # (2H, 4H)
        flat_weights += [w_cat, b.astype(jnp.float32)]

    # Bulk-copy the whole table to VMEM when small (threshold conservative for
    # v7x's 64 MiB / default scoped limits); otherwise keep the per-row DMA gather.
    table_bytes = V * E * embedding.dtype.itemsize
    bulk_gather = table_bytes <= vmem_table_limit_bytes

    kernel = make_encoder_kernel(n_layers, S, H, E, V,
                                 bulk_gather=bulk_gather, use_bf16=use_bf16)

    # Clamp out-of-range ids (torch.nn.Embedding would error; documented deviation).
    ids = jnp.clip(seq_ids.astype(jnp.int32), 0, V - 1)

    if bulk_gather:
        ids_arg = ids.reshape(S, 1)
        in_specs = [
            pl.BlockSpec(memory_space=pltpu.MemorySpace.VMEM),   # ids (S,1)
            pl.BlockSpec(memory_space=pltpu.MemorySpace.VMEM),   # whole table, one DMA
        ]
        scratch_shapes = []
    else:
        ids_arg = ids
        in_specs = [
            pl.BlockSpec(memory_space=pltpu.MemorySpace.SMEM),   # ids for scalar indexing
            pl.BlockSpec(memory_space=pl.ANY),                   # table stays in HBM
        ]
        scratch_shapes = [
            pltpu.VMEM((S, E), jnp.float32),                     # gathered embedding rows
            pltpu.SemaphoreType.DMA((S,)),                       # one sem per row DMA
        ]
    in_specs += [pl.BlockSpec(memory_space=pltpu.MemorySpace.VMEM)] * len(flat_weights)

    out_shape = (
        jax.ShapeDtypeStruct((n_layers, hidden_size), jnp.float32),
        jax.ShapeDtypeStruct((n_layers, hidden_size), jnp.float32),
    )
    out_specs = (
        pl.BlockSpec(memory_space=pltpu.MemorySpace.VMEM),
        pl.BlockSpec(memory_space=pltpu.MemorySpace.VMEM),
    )

    # TODO(synk): with a single unbatched sequence there is nothing to shard across
    # the two v7x TensorCores; a batched variant would add a leading "parallel" grid
    # axis over sequences and pack B sequences into the sublane dim of the matmuls.
    return pl.pallas_call(
        kernel,
        out_shape=out_shape,
        in_specs=in_specs,
        out_specs=out_specs,
        scratch_shapes=scratch_shapes,
    )(ids_arg, embedding, *flat_weights)


def encoder_reference(seq_ids, embedding, layer_params, hidden_size):
    """Pure-JAX reference matching torch.nn.Embedding + nn.LSTM (eval mode)."""
    H = hidden_size
    dot = functools.partial(jnp.dot, precision=jax.lax.Precision.HIGHEST)
    x = embedding[seq_ids]  # (S, E)
    h_list, c_list = [], []
    inp = x
    for (w_ih_t, w_hh_t, b) in layer_params:
        h = jnp.zeros((H,), jnp.float32)
        c = jnp.zeros((H,), jnp.float32)
        outs = []
        for t in range(inp.shape[0]):
            gates = dot(inp[t], w_ih_t) + dot(h, w_hh_t) + b[0]
            i_g = jax.nn.sigmoid(gates[0:H])
            f_g = jax.nn.sigmoid(gates[H:2 * H])
            g_g = jnp.tanh(gates[2 * H:3 * H])
            o_g = jax.nn.sigmoid(gates[3 * H:4 * H])
            c = f_g * c + i_g * g_g
            h = o_g * jnp.tanh(c)
            outs.append(h)
        inp = jnp.stack(outs)
        h_list.append(h)
        c_list.append(c)
    return jnp.stack(h_list), jnp.stack(c_list)


if __name__ == "__main__":
    # Config consistent with the module: vocab_size, hidden_size, embedding_dim,
    # n_layers, dropout (dropout is a no-op in eval mode).
    vocab_size = 50
    hidden_size = 32
    embedding_dim = 32
    n_layers = 2
    seq_len = 8

    key = jax.random.PRNGKey(0)
    k_emb, k_seq, *k_layers = jax.random.split(key, 2 + 4 * n_layers)

    # Deterministic parameter init (shapes follow nn.Embedding / nn.LSTM).
    embedding = jax.random.normal(k_emb, (vocab_size, embedding_dim), jnp.float32)
    seq_ids = jax.random.randint(k_seq, (seq_len,), 0, vocab_size, jnp.int32)

    bound = 1.0 / jnp.sqrt(hidden_size)
    layer_params = []
    for layer in range(n_layers):
        in_dim = embedding_dim if layer == 0 else hidden_size
        kw1, kw2, kb1, kb2 = k_layers[4 * layer:4 * layer + 4]
        w_ih = jax.random.uniform(kw1, (4 * hidden_size, in_dim), jnp.float32, -bound, bound)
        w_hh = jax.random.uniform(kw2, (4 * hidden_size, hidden_size), jnp.float32, -bound, bound)
        b_ih = jax.random.uniform(kb1, (4 * hidden_size,), jnp.float32, -bound, bound)
        b_hh = jax.random.uniform(kb2, (4 * hidden_size,), jnp.float32, -bound, bound)
        # Pre-transpose for x @ W^T form, combine the two biases.
        layer_params.append((w_ih.T, w_hh.T, (b_ih + b_hh).reshape(1, -1)))

    h_ref, c_ref = encoder_reference(seq_ids, embedding, layer_params, hidden_size)

    # Default / perf path: bf16 MXU operands, f32 accumulation and f32 elementwise.
    h_bf, c_bf = jax.block_until_ready(
        encoder_forward(seq_ids, embedding, layer_params, hidden_size, use_bf16=True))
    assert h_bf.shape == (n_layers, hidden_size) and c_bf.shape == (n_layers, hidden_size)
    assert jnp.allclose(h_bf, h_ref, atol=3e-2, rtol=3e-2), jnp.max(jnp.abs(h_bf - h_ref))
    assert jnp.allclose(c_bf, c_ref, atol=3e-2, rtol=3e-2), jnp.max(jnp.abs(c_bf - c_ref))

    # Tight-tolerance correctness path: same kernel structure with f32 MXU operands.
    h_f32, c_f32 = jax.block_until_ready(
        encoder_forward(seq_ids, embedding, layer_params, hidden_size, use_bf16=False))
    assert jnp.allclose(h_f32, h_ref, atol=2e-3, rtol=2e-3), jnp.max(jnp.abs(h_f32 - h_ref))
    assert jnp.allclose(c_f32, c_ref, atol=2e-3, rtol=2e-3), jnp.max(jnp.abs(c_f32 - c_ref))

    print("KERNEL_OK")
</pallas_src>

<mosaic_0001>
module attributes {stable_mosaic.version = 11 : i64} {
  func.func @kernel(%arg0: memref<8x1xi32, #tpu.memory_space<vmem>>, %arg1: memref<50x32xf32, #tpu.memory_space<vmem>>, %arg2: memref<32x128xbf16, #tpu.memory_space<vmem>>, %arg3: memref<32x128xbf16, #tpu.memory_space<vmem>>, %arg4: memref<1x128xf32, #tpu.memory_space<vmem>>, %arg5: memref<64x128xbf16, #tpu.memory_space<vmem>>, %arg6: memref<1x128xf32, #tpu.memory_space<vmem>>, %arg7: memref<2x32xf32, #tpu.memory_space<vmem>>, %arg8: memref<2x32xf32, #tpu.memory_space<vmem>>) attributes {dimension_semantics = [], scalar_prefetch = 0 : i64, scratch_operands = 0 : i64, tpu.core_type = #tpu.core_type<tc>} {
    %c0 = arith.constant 0 : index
    %c0_0 = arith.constant 0 : index
    %0 = vector.load %arg2[%c0, %c0_0] : memref<32x128xbf16, #tpu.memory_space<vmem>>, vector<32x128xbf16>
    %c0_1 = arith.constant 0 : index
    %c0_2 = arith.constant 0 : index
    %1 = vector.load %arg3[%c0_1, %c0_2] : memref<32x128xbf16, #tpu.memory_space<vmem>>, vector<32x128xbf16>
    %c0_3 = arith.constant 0 : index
    %c0_4 = arith.constant 0 : index
    %2 = vector.load %arg4[%c0_3, %c0_4] : memref<1x128xf32, #tpu.memory_space<vmem>>, vector<1x128xf32>
    %c0_5 = arith.constant 0 : index
    %c0_6 = arith.constant 0 : index
    %3 = vector.load %arg5[%c0_5, %c0_6] : memref<64x128xbf16, #tpu.memory_space<vmem>>, vector<64x128xbf16>
    %c0_7 = arith.constant 0 : index
    %c0_8 = arith.constant 0 : index
    %4 = vector.load %arg6[%c0_7, %c0_8] : memref<1x128xf32, #tpu.memory_space<vmem>>, vector<1x128xf32>
    %cst = arith.constant 0.000000e+00 : f32
    %5 = vector.broadcast %cst : f32 to vector<1x32xf32>
    %cst_9 = arith.constant 0.000000e+00 : f32
    %6 = vector.broadcast %cst_9 : f32 to vector<1x32xf32>
    %cst_10 = arith.constant 0.000000e+00 : f32
    %7 = vector.broadcast %cst_10 : f32 to vector<1x32xf32>
    %cst_11 = arith.constant 0.000000e+00 : f32
    %8 = vector.broadcast %cst_11 : f32 to vector<1x32xf32>
    %c0_12 = arith.constant 0 : index
    %c0_13 = arith.constant 0 : index
    %9 = vector.load %arg0[%c0_12, %c0_13] : memref<8x1xi32, #tpu.memory_space<vmem>>, vector<8x1xi32>
    %10 = tpu.iota {dimensions = array<i32: 1>} : vector<8x50xi32>
    %11 = vector.broadcast %9 : vector<8x1xi32> to vector<8x50xi32>
    %12 = arith.cmpi eq, %10, %11 : vector<8x50xi32>
    %13 = arith.extui %12 : vector<8x50xi1> to vector<8x50xi32>
    %14 = arith.sitofp %13 : vector<8x50xi32> to vector<8x50xf32>
    %c0_14 = arith.constant 0 : index
    %c0_15 = arith.constant 0 : index
    %15 = vector.load %arg1[%c0_14, %c0_15] : memref<50x32xf32, #tpu.memory_space<vmem>>, vector<50x32xf32>
    %cst_16 = arith.constant dense<0.000000e+00> : vector<8x32xf32>
    %16 = tpu.matmul %14, %15, %cst_16 {dimension_numbers = #tpu.dot_dimension_numbers<[1], [0], [0], [1], [0, 0, 1, 1], [], []>} : vector<8x50xf32>, vector<50x32xf32>, vector<8x32xf32> -> vector<8x32xf32>
    %17 = arith.truncf %16 : vector<8x32xf32> to vector<8x32xbf16>
    %cst_17 = arith.constant dense<0.000000e+00> : vector<8x128xf32>
    %18 = tpu.matmul %17, %0, %cst_17 {dimension_numbers = #tpu.dot_dimension_numbers<[1], [0], [0], [1], [0, 0, 1, 1], [], []>} : vector<8x32xbf16>, vector<32x128xbf16>, vector<8x128xf32> -> vector<8x128xf32>
    %19 = vector.broadcast %2 : vector<1x128xf32> to vector<8x128xf32>
    %20 = arith.addf %18, %19 : vector<8x128xf32>
    %21 = vector.extract_strided_slice %20 {offsets = [0, 0], sizes = [1, 128], strides = [1, 1]} : vector<8x128xf32> to vector<1x128xf32>
    %22 = arith.truncf %5 : vector<1x32xf32> to vector<1x32xbf16>
    %cst_18 = arith.constant dense<0.000000e+00> : vector<1x128xf32>
    %23 = tpu.matmul %22, %1, %cst_18 {dimension_numbers = #tpu.dot_dimension_numbers<[1], [0], [0], [1], [0, 0, 1, 1], [], []>} : vector<1x32xbf16>, vector<32x128xbf16>, vector<1x128xf32> -> vector<1x128xf32>
    %24 = arith.addf %21, %23 : vector<1x128xf32>
    %25 = arith.negf %24 : vector<1x128xf32>
    %26 = math.exp %25 : vector<1x128xf32>
    %cst_19 = arith.constant 1.000000e+00 : f32
    %27 = vector.broadcast %cst_19 : f32 to vector<1x128xf32>
    %28 = arith.addf %27, %26 : vector<1x128xf32>
    %29 = arith.divf %27, %28 : vector<1x128xf32>
    %30 = math.tanh %24 : vector<1x128xf32>
    %31 = vector.extract_strided_slice %29 {offsets = [0, 0], sizes = [1, 32], strides = [1, 1]} : vector<1x128xf32> to vector<1x32xf32>
    %32 = vector.extract_strided_slice %29 {offsets = [0, 32], sizes = [1, 32], strides = [1, 1]} : vector<1x128xf32> to vector<1x32xf32>
    %33 = vector.extract_strided_slice %29 {offsets = [0, 96], sizes = [1, 32], strides = [1, 1]} : vector<1x128xf32> to vector<1x32xf32>
    %34 = vector.extract_strided_slice %30 {offsets = [0, 64], sizes = [1, 32], strides = [1, 1]} : vector<1x128xf32> to vector<1x32xf32>
    %35 = arith.mulf %32, %7 : vector<1x32xf32>
    %36 = arith.mulf %31, %34 : vector<1x32xf32>
    %37 = arith.addf %35, %36 : vector<1x32xf32>
    %38 = math.tanh %37 : vector<1x32xf32>
    %39 = arith.mulf %33, %38 : vector<1x32xf32>
    %40 = tpu.concatenate %39, %6 in 1 : vector<1x32xf32>, vector<1x32xf32> -> vector<1x64xf32>
    %41 = arith.truncf %40 : vector<1x64xf32> to vector<1x64xbf16>
    %cst_20 = arith.constant dense<0.000000e+00> : vector<1x128xf32>
    %42 = tpu.matmul %41, %3, %cst_20 {dimension_numbers = #tpu.dot_dimension_numbers<[1], [0], [0], [1], [0, 0, 1, 1], [], []>} : vector<1x64xbf16>, vector<64x128xbf16>, vector<1x128xf32> -> vector<1x128xf32>
    %43 = arith.addf %42, %4 : vector<1x128xf32>
    %44 = arith.negf %43 : vector<1x128xf32>
    %45 = math.exp %44 : vector<1x128xf32>
    %cst_21 = arith.constant 1.000000e+00 : f32
    %46 = vector.broadcast %cst_21 : f32 to vector<1x128xf32>
    %47 = arith.addf %46, %45 : vector<1x128xf32>
    %48 = arith.divf %46, %47 : vector<1x128xf32>
    %49 = math.tanh %43 : vector<1x128xf32>
    %50 = vector.extract_strided_slice %48 {offsets = [0, 0], sizes = [1, 32], strides = [1, 1]} : vector<1x128xf32> to vector<1x32xf32>
    %51 = vector.extract_strided_slice %48 {offsets = [0, 32], sizes = [1, 32], strides = [1, 1]} : vector<1x128xf32> to vector<1x32xf32>
    %52 = vector.extract_strided_slice %48 {offsets = [0, 96], sizes = [1, 32], strides = [1, 1]} : vector<1x128xf32> to vector<1x32xf32>
    %53 = vector.extract_strided_slice %49 {offsets = [0, 64], sizes = [1, 32], strides = [1, 1]} : vector<1x128xf32> to vector<1x32xf32>
    %54 = arith.mulf %51, %8 : vector<1x32xf32>
    %55 = arith.mulf %50, %53 : vector<1x32xf32>
    %56 = arith.addf %54, %55 : vector<1x32xf32>
    %57 = math.tanh %56 : vector<1x32xf32>
    %58 = arith.mulf %52, %57 : vector<1x32xf32>
    %59 = vector.extract_strided_slice %20 {offsets = [1, 0], sizes = [1, 128], strides = [1, 1]} : vector<8x128xf32> to vector<1x128xf32>
    %60 = arith.truncf %39 : vector<1x32xf32> to vector<1x32xbf16>
    %cst_22 = arith.constant dense<0.000000e+00> : vector<1x128xf32>
    %61 = tpu.matmul %60, %1, %cst_22 {dimension_numbers = #tpu.dot_dimension_numbers<[1], [0], [0], [1], [0, 0, 1, 1], [], []>} : vector<1x32xbf16>, vector<32x128xbf16>, vector<1x128xf32> -> vector<1x128xf32>
    %62 = arith.addf %59, %61 : vector<1x128xf32>
    %63 = arith.negf %62 : vector<1x128xf32>
    %64 = math.exp %63 : vector<1x128xf32>
    %cst_23 = arith.constant 1.000000e+00 : f32
    %65 = vector.broadcast %cst_23 : f32 to vector<1x128xf32>
    %66 = arith.addf %65, %64 : vector<1x128xf32>
    %67 = arith.divf %65, %66 : vector<1x128xf32>
    %68 = math.tanh %62 : vector<1x128xf32>
    %69 = vector.extract_strided_slice %67 {offsets = [0, 0], sizes = [1, 32], strides = [1, 1]} : vector<1x128xf32> to vector<1x32xf32>
    %70 = vector.extract_strided_slice %67 {offsets = [0, 32], sizes = [1, 32], strides = [1, 1]} : vector<1x128xf32> to vector<1x32xf32>
    %71 = vector.extract_strided_slice %67 {offsets = [0, 96], sizes = [1, 32], strides = [1, 1]} : vector<1x128xf32> to vector<1x32xf32>
    %72 = vector.extract_strided_slice %68 {offsets = [0, 64], sizes = [1, 32], strides = [1, 1]} : vector<1x128xf32> to vector<1x32xf32>
    %73 = arith.mulf %70, %37 : vector<1x32xf32>
    %74 = arith.mulf %69, %72 : vector<1x32xf32>
    %75 = arith.addf %73, %74 : vector<1x32xf32>
    %76 = math.tanh %75 : vector<1x32xf32>
    %77 = arith.mulf %71, %76 : vector<1x32xf32>
    %78 = tpu.concatenate %77, %58 in 1 : vector<1x32xf32>, vector<1x32xf32> -> vector<1x64xf32>
    %79 = arith.truncf %78 : vector<1x64xf32> to vector<1x64xbf16>
    %cst_24 = arith.constant dense<0.000000e+00> : vector<1x128xf32>
    %80 = tpu.matmul %79, %3, %cst_24 {dimension_numbers = #tpu.dot_dimension_numbers<[1], [0], [0], [1], [0, 0, 1, 1], [], []>} : vector<1x64xbf16>, vector<64x128xbf16>, vector<1x128xf32> -> vector<1x128xf32>
    %81 = arith.addf %80, %4 : vector<1x128xf32>
    %82 = arith.negf %81 : vector<1x128xf32>
    %83 = math.exp %82 : vector<1x128xf32>
    %cst_25 = arith.constant 1.000000e+00 : f32
    %84 = vector.broadcast %cst_25 : f32 to vector<1x128xf32>
    %85 = arith.addf %84, %83 : vector<1x128xf32>
    %86 = arith.divf %84, %85 : vector<1x128xf32>
    %87 = math.tanh %81 : vector<1x128xf32>
    %88 = vector.extract_strided_slice %86 {offsets = [0, 0], sizes = [1, 32], strides = [1, 1]} : vector<1x128xf32> to vector<1x32xf32>
    %89 = vector.extract_strided_slice %86 {offsets = [0, 32], sizes = [1, 32], strides = [1, 1]} : vector<1x128xf32> to vector<1x32xf32>
    %90 = vector.extract_strided_slice %86 {offsets = [0, 96], sizes = [1, 32], strides = [1, 1]} : vector<1x128xf32> to vector<1x32xf32>
    %91 = vector.extract_strided_slice %87 {offsets = [0, 64], sizes = [1, 32], strides = [1, 1]} : vector<1x128xf32> to vector<1x32xf32>
    %92 = arith.mulf %89, %56 : vector<1x32xf32>
    %93 = arith.mulf %88, %91 : vector<1x32xf32>
    %94 = arith.addf %92, %93 : vector<1x32xf32>
    %95 = math.tanh %94 : vector<1x32xf32>
    %96 = arith.mulf %90, %95 : vector<1x32xf32>
    %97 = vector.extract_strided_slice %20 {offsets = [2, 0], sizes = [1, 128], strides = [1, 1]} : vector<8x128xf32> to vector<1x128xf32>
    %98 = arith.truncf %77 : vector<1x32xf32> to vector<1x32xbf16>
    %cst_26 = arith.constant dense<0.000000e+00> : vector<1x128xf32>
    %99 = tpu.matmul %98, %1, %cst_26 {dimension_numbers = #tpu.dot_dimension_numbers<[1], [0], [0], [1], [0, 0, 1, 1], [], []>} : vector<1x32xbf16>, vector<32x128xbf16>, vector<1x128xf32> -> vector<1x128xf32>
    %100 = arith.addf %97, %99 : vector<1x128xf32>
    %101 = arith.negf %100 : vector<1x128xf32>
    %102 = math.exp %101 : vector<1x128xf32>
    %cst_27 = arith.constant 1.000000e+00 : f32
    %103 = vector.broadcast %cst_27 : f32 to vector<1x128xf32>
    %104 = arith.addf %103, %102 : vector<1x128xf32>
    %105 = arith.divf %103, %104 : vector<1x128xf32>
    %106 = math.tanh %100 : vector<1x128xf32>
    %107 = vector.extract_strided_slice %105 {offsets = [0, 0], sizes = [1, 32], strides = [1, 1]} : vector<1x128xf32> to vector<1x32xf32>
    %108 = vector.extract_strided_slice %105 {offsets = [0, 32], sizes = [1, 32], strides = [1, 1]} : vector<1x128xf32> to vector<1x32xf32>
    %109 = vector.extract_strided_slice %105 {offsets = [0, 96], sizes = [1, 32], strides = [1, 1]} : vector<1x128xf32> to vector<1x32xf32>
    %110 = vector.extract_strided_slice %106 {offsets = [0, 64], sizes = [1, 32], strides = [1, 1]} : vector<1x128xf32> to vector<1x32xf32>
    %111 = arith.mulf %108, %75 : vector<1x32xf32>
    %112 = arith.mulf %107, %110 : vector<1x32xf32>
    %113 = arith.addf %111, %112 : vector<1x32xf32>
    %114 = math.tanh %113 : vector<1x32xf32>
    %115 = arith.mulf %109, %114 : vector<1x32xf32>
    %116 = tpu.concatenate %115, %96 in 1 : vector<1x32xf32>, vector<1x32xf32> -> vector<1x64xf32>
    %117 = arith.truncf %116 : vector<1x64xf32> to vector<1x64xbf16>
    %cst_28 = arith.constant dense<0.000000e+00> : vector<1x128xf32>
    %118 = tpu.matmul %117, %3, %cst_28 {dimension_numbers = #tpu.dot_dimension_numbers<[1], [0], [0], [1], [0, 0, 1, 1], [], []>} : vector<1x64xbf16>, vector<64x128xbf16>, vector<1x128xf32> -> vector<1x128xf32>
    %119 = arith.addf %118, %4 : vector<1x128xf32>
    %120 = arith.negf %119 : vector<1x128xf32>
    %121 = math.exp %120 : vector<1x128xf32>
    %cst_29 = arith.constant 1.000000e+00 : f32
    %122 = vector.broadcast %cst_29 : f32 to vector<1x128xf32>
    %123 = arith.addf %122, %121 : vector<1x128xf32>
    %124 = arith.divf %122, %123 : vector<1x128xf32>
    %125 = math.tanh %119 : vector<1x128xf32>
    %126 = vector.extract_strided_slice %124 {offsets = [0, 0], sizes = [1, 32], strides = [1, 1]} : vector<1x128xf32> to vector<1x32xf32>
    %127 = vector.extract_strided_slice %124 {offsets = [0, 32], sizes = [1, 32], strides = [1, 1]} : vector<1x128xf32> to vector<1x32xf32>
    %128 = vector.extract_strided_slice %124 {offsets = [0, 96], sizes = [1, 32], strides = [1, 1]} : vector<1x128xf32> to vector<1x32xf32>
    %129 = vector.extract_strided_slice %125 {offsets = [0, 64], sizes = [1, 32], strides = [1, 1]} : vector<1x128xf32> to vector<1x32xf32>
    %130 = arith.mulf %127, %94 : vector<1x32xf32>
    %131 = arith.mulf %126, %129 : vector<1x32xf32>
    %132 = arith.addf %130, %131 : vector<1x32xf32>
    %133 = math.tanh %132 : vector<1x32xf32>
    %134 = arith.mulf %128, %133 : vector<1x32xf32>
    %135 = vector.extract_strided_slice %20 {offsets = [3, 0], sizes = [1, 128], strides = [1, 1]} : vector<8x128xf32> to vector<1x128xf32>
    %136 = arith.truncf %115 : vector<1x32xf32> to vector<1x32xbf16>
    %cst_30 = arith.constant dense<0.000000e+00> : vector<1x128xf32>
    %137 = tpu.matmul %136, %1, %cst_30 {dimension_numbers = #tpu.dot_dimension_numbers<[1], [0], [0], [1], [0, 0, 1, 1], [], []>} : vector<1x32xbf16>, vector<32x128xbf16>, vector<1x128xf32> -> vector<1x128xf32>
    %138 = arith.addf %135, %137 : vector<1x128xf32>
    %139 = arith.negf %138 : vector<1x128xf32>
    %140 = math.exp %139 : vector<1x128xf32>
    %cst_31 = arith.constant 1.000000e+00 : f32
    %141 = vector.broadcast %cst_31 : f32 to vector<1x128xf32>
    %142 = arith.addf %141, %140 : vector<1x128xf32>
    %143 = arith.divf %141, %142 : vector<1x128xf32>
    %144 = math.tanh %138 : vector<1x128xf32>
    %145 = vector.extract_strided_slice %143 {offsets = [0, 0], sizes = [1, 32], strides = [1, 1]} : vector<1x128xf32> to vector<1x32xf32>
    %146 = vector.extract_strided_slice %143 {offsets = [0, 32], sizes = [1, 32], strides = [1, 1]} : vector<1x128xf32> to vector<1x32xf32>
    %147 = vector.extract_strided_slice %143 {offsets = [0, 96], sizes = [1, 32], strides = [1, 1]} : vector<1x128xf32> to vector<1x32xf32>
    %148 = vector.extract_strided_slice %144 {offsets = [0, 64], sizes = [1, 32], strides = [1, 1]} : vector<1x128xf32> to vector<1x32xf32>
    %149 = arith.mulf %146, %113 : vector<1x32xf32>
    %150 = arith.mulf %145, %148 : vector<1x32xf32>
    %151 = arith.addf %149, %150 : vector<1x32xf32>
    %152 = math.tanh %151 : vector<1x32xf32>
    %153 = arith.mulf %147, %152 : vector<1x32xf32>
    %154 = tpu.concatenate %153, %134 in 1 : vector<1x32xf32>, vector<1x32xf32> -> vector<1x64xf32>
    %155 = arith.truncf %154 : vector<1x64xf32> to vector<1x64xbf16>
    %cst_32 = arith.constant dense<0.000000e+00> : vector<1x128xf32>
    %156 = tpu.matmul %155, %3, %cst_32 {dimension_numbers = #tpu.dot_dimension_numbers<[1], [0], [0], [1], [0, 0, 1, 1], [], []>} : vector<1x64xbf16>, vector<64x128xbf16>, vector<1x128xf32> -> vector<1x128xf32>
    %157 = arith.addf %156, %4 : vector<1x128xf32>
    %158 = arith.negf %157 : vector<1x128xf32>
    %159 = math.exp %158 : vector<1x128xf32>
    %cst_33 = arith.constant 1.000000e+00 : f32
    %160 = vector.broadcast %cst_33 : f32 to vector<1x128xf32>
    %161 = arith.addf %160, %159 : vector<1x128xf32>
    %162 = arith.divf %160, %161 : vector<1x128xf32>
    %163 = math.tanh %157 : vector<1x128xf32>
    %164 = vector.extract_strided_slice %162 {offsets = [0, 0], sizes = [1, 32], strides = [1, 1]} : vector<1x128xf32> to vector<1x32xf32>
    %165 = vector.extract_strided_slice %162 {offsets = [0, 32], sizes = [1, 32], strides = [1, 1]} : vector<1x128xf32> to vector<1x32xf32>
    %166 = vector.extract_strided_slice %162 {offsets = [0, 96], sizes = [1, 32], strides = [1, 1]} : vector<1x128xf32> to vector<1x32xf32>
    %167 = vector.extract_strided_slice %163 {offsets = [0, 64], sizes = [1, 32], strides = [1, 1]} : vector<1x128xf32> to vector<1x32xf32>
    %168 = arith.mulf %165, %132 : vector<1x32xf32>
    %169 = arith.mulf %164, %167 : vector<1x32xf32>
    %170 = arith.addf %168, %169 : vector<1x32xf32>
    %171 = math.tanh %170 : vector<1x32xf32>
    %172 = arith.mulf %166, %171 : vector<1x32xf32>
    %173 = vector.extract_strided_slice %20 {offsets = [4, 0], sizes = [1, 128], strides = [1, 1]} : vector<8x128xf32> to vector<1x128xf32>
    %174 = arith.truncf %153 : vector<1x32xf32> to vector<1x32xbf16>
    %cst_34 = arith.constant dense<0.000000e+00> : vector<1x128xf32>
    %175 = tpu.matmul %174, %1, %cst_34 {dimension_numbers = #tpu.dot_dimension_numbers<[1], [0], [0], [1], [0, 0, 1, 1], [], []>} : vector<1x32xbf16>, vector<32x128xbf16>, vector<1x128xf32> -> vector<1x128xf32>
    %176 = arith.addf %173, %175 : vector<1x128xf32>
    %177 = arith.negf %176 : vector<1x128xf32>
    %178 = math.exp %177 : vector<1x128xf32>
    %cst_35 = arith.constant 1.000000e+00 : f32
    %179 = vector.broadcast %cst_35 : f32 to vector<1x128xf32>
    %180 = arith.addf %179, %178 : vector<1x128xf32>
    %181 = arith.divf %179, %180 : vector<1x128xf32>
    %182 = math.tanh %176 : vector<1x128xf32>
    %183 = vector.extract_strided_slice %181 {offsets = [0, 0], sizes = [1, 32], strides = [1, 1]} : vector<1x128xf32> to vector<1x32xf32>
    %184 = vector.extract_strided_slice %181 {offsets = [0, 32], sizes = [1, 32], strides = [1, 1]} : vector<1x128xf32> to vector<1x32xf32>
    %185 = vector.extract_strided_slice %181 {offsets = [0, 96], sizes = [1, 32], strides = [1, 1]} : vector<1x128xf32> to vector<1x32xf32>
    %186 = vector.extract_strided_slice %182 {offsets = [0, 64], sizes = [1, 32], strides = [1, 1]} : vector<1x128xf32> to vector<1x32xf32>
    %187 = arith.mulf %184, %151 : vector<1x32xf32>
    %188 = arith.mulf %183, %186 : vector<1x32xf32>
    %189 = arith.addf %187, %188 : vector<1x32xf32>
    %190 = math.tanh %189 : vector<1x32xf32>
    %191 = arith.mulf %185, %190 : vector<1x32xf32>
    %192 = tpu.concatenate %191, %172 in 1 : vector<1x32xf32>, vector<1x32xf32> -> vector<1x64xf32>
    %193 = arith.truncf %192 : vector<1x64xf32> to vector<1x64xbf16>
    %cst_36 = arith.constant dense<0.000000e+00> : vector<1x128xf32>
    %194 = tpu.matmul %193, %3, %cst_36 {dimension_numbers = #tpu.dot_dimension_numbers<[1], [0], [0], [1], [0, 0, 1, 1], [], []>} : vector<1x64xbf16>, vector<64x128xbf16>, vector<1x128xf32> -> vector<1x128xf32>
    %195 = arith.addf %194, %4 : vector<1x128xf32>
    %196 = arith.negf %195 : vector<1x128xf32>
    %197 = math.exp %196 : vector<1x128xf32>
    %cst_37 = arith.constant 1.000000e+00 : f32
    %198 = vector.broadcast %cst_37 : f32 to vector<1x128xf32>
    %199 = arith.addf %198, %197 : vector<1x128xf32>
    %200 = arith.divf %198, %199 : vector<1x128xf32>
    %201 = math.tanh %195 : vector<1x128xf32>
    %202 = vector.extract_strided_slice %200 {offsets = [0, 0], sizes = [1, 32], strides = [1, 1]} : vector<1x128xf32> to vector<1x32xf32>
    %203 = vector.extract_strided_slice %200 {offsets = [0, 32], sizes = [1, 32], strides = [1, 1]} : vector<1x128xf32> to vector<1x32xf32>
    %204 = vector.extract_strided_slice %200 {offsets = [0, 96], sizes = [1, 32], strides = [1, 1]} : vector<1x128xf32> to vector<1x32xf32>
    %205 = vector.extract_strided_slice %201 {offsets = [0, 64], sizes = [1, 32], strides = [1, 1]} : vector<1x128xf32> to vector<1x32xf32>
    %206 = arith.mulf %203, %170 : vector<1x32xf32>
    %207 = arith.mulf %202, %205 : vector<1x32xf32>
    %208 = arith.addf %206, %207 : vector<1x32xf32>
    %209 = math.tanh %208 : vector<1x32xf32>
    %210 = arith.mulf %204, %209 : vector<1x32xf32>
    %211 = vector.extract_strided_slice %20 {offsets = [5, 0], sizes = [1, 128], strides = [1, 1]} : vector<8x128xf32> to vector<1x128xf32>
    %212 = arith.truncf %191 : vector<1x32xf32> to vector<1x32xbf16>
    %cst_38 = arith.constant dense<0.000000e+00> : vector<1x128xf32>
    %213 = tpu.matmul %212, %1, %cst_38 {dimension_numbers = #tpu.dot_dimension_numbers<[1], [0], [0], [1], [0, 0, 1, 1], [], []>} : vector<1x32xbf16>, vector<32x128xbf16>, vector<1x128xf32> -> vector<1x128xf32>
    %214 = arith.addf %211, %213 : vector<1x128xf32>
    %215 = arith.negf %214 : vector<1x128xf32>
    %216 = math.exp %215 : vector<1x128xf32>
    %cst_39 = arith.constant 1.000000e+00 : f32
    %217 = vector.broadcast %cst_39 : f32 to vector<1x128xf32>
    %218 = arith.addf %217, %216 : vector<1x128xf32>
    %219 = arith.divf %217, %218 : vector<1x128xf32>
    %220 = math.tanh %214 : vector<1x128xf32>
    %221 = vector.extract_strided_slice %219 {offsets = [0, 0], sizes = [1, 32], strides = [1, 1]} : vector<1x128xf32> to vector<1x32xf32>
    %222 = vector.extract_strided_slice %219 {offsets = [0, 32], sizes = [1, 32], strides = [1, 1]} : vector<1x128xf32> to vector<1x32xf32>
    %223 = vector.extract_strided_slice %219 {offsets = [0, 96], sizes = [1, 32], strides = [1, 1]} : vector<1x128xf32> to vector<1x32xf32>
    %224 = vector.extract_strided_slice %220 {offsets = [0, 64], sizes = [1, 32], strides = [1, 1]} : vector<1x128xf32> to vector<1x32xf32>
    %225 = arith.mulf %222, %189 : vector<1x32xf32>
    %226 = arith.mulf %221, %224 : vector<1x32xf32>
    %227 = arith.addf %225, %226 : vector<1x32xf32>
    %228 = math.tanh %227 : vector<1x32xf32>
    %229 = arith.mulf %223, %228 : vector<1x32xf32>
    %230 = tpu.concatenate %229, %210 in 1 : vector<1x32xf32>, vector<1x32xf32> -> vector<1x64xf32>
    %231 = arith.truncf %230 : vector<1x64xf32> to vector<1x64xbf16>
    %cst_40 = arith.constant dense<0.000000e+00> : vector<1x128xf32>
    %232 = tpu.matmul %231, %3, %cst_40 {dimension_numbers = #tpu.dot_dimension_numbers<[1], [0], [0], [1], [0, 0, 1, 1], [], []>} : vector<1x64xbf16>, vector<64x128xbf16>, vector<1x128xf32> -> vector<1x128xf32>
    %233 = arith.addf %232, %4 : vector<1x128xf32>
    %234 = arith.negf %233 : vector<1x128xf32>
    %235 = math.exp %234 : vector<1x128xf32>
    %cst_41 = arith.constant 1.000000e+00 : f32
    %236 = vector.broadcast %cst_41 : f32 to vector<1x128xf32>
    %237 = arith.addf %236, %235 : vector<1x128xf32>
    %238 = arith.divf %236, %237 : vector<1x128xf32>
    %239 = math.tanh %233 : vector<1x128xf32>
    %240 = vector.extract_strided_slice %238 {offsets = [0, 0], sizes = [1, 32], strides = [1, 1]} : vector<1x128xf32> to vector<1x32xf32>
    %241 = vector.extract_strided_slice %238 {offsets = [0, 32], sizes = [1, 32], strides = [1, 1]} : vector<1x128xf32> to vector<1x32xf32>
    %242 = vector.extract_strided_slice %238 {offsets = [0, 96], sizes = [1, 32], strides = [1, 1]} : vector<1x128xf32> to vector<1x32xf32>
    %243 = vector.extract_strided_slice %239 {offsets = [0, 64], sizes = [1, 32], strides = [1, 1]} : vector<1x128xf32> to vector<1x32xf32>
    %244 = arith.mulf %241, %208 : vector<1x32xf32>
    %245 = arith.mulf %240, %243 : vector<1x32xf32>
    %246 = arith.addf %244, %245 : vector<1x32xf32>
    %247 = math.tanh %246 : vector<1x32xf32>
    %248 = arith.mulf %242, %247 : vector<1x32xf32>
    %249 = vector.extract_strided_slice %20 {offsets = [6, 0], sizes = [1, 128], strides = [1, 1]} : vector<8x128xf32> to vector<1x128xf32>
    %250 = arith.truncf %229 : vector<1x32xf32> to vector<1x32xbf16>
    %cst_42 = arith.constant dense<0.000000e+00> : vector<1x128xf32>
    %251 = tpu.matmul %250, %1, %cst_42 {dimension_numbers = #tpu.dot_dimension_numbers<[1], [0], [0], [1], [0, 0, 1, 1], [], []>} : vector<1x32xbf16>, vector<32x128xbf16>, vector<1x128xf32> -> vector<1x128xf32>
    %252 = arith.addf %249, %251 : vector<1x128xf32>
    %253 = arith.negf %252 : vector<1x128xf32>
    %254 = math.exp %253 : vector<1x128xf32>
    %cst_43 = arith.constant 1.000000e+00 : f32
    %255 = vector.broadcast %cst_43 : f32 to vector<1x128xf32>
    %256 = arith.addf %255, %254 : vector<1x128xf32>
    %257 = arith.divf %255, %256 : vector<1x128xf32>
    %258 = math.tanh %252 : vector<1x128xf32>
    %259 = vector.extract_strided_slice %257 {offsets = [0, 0], sizes = [1, 32], strides = [1, 1]} : vector<1x128xf32> to vector<1x32xf32>
    %260 = vector.extract_strided_slice %257 {offsets = [0, 32], sizes = [1, 32], strides = [1, 1]} : vector<1x128xf32> to vector<1x32xf32>
    %261 = vector.extract_strided_slice %257 {offsets = [0, 96], sizes = [1, 32], strides = [1, 1]} : vector<1x128xf32> to vector<1x32xf32>
    %262 = vector.extract_strided_slice %258 {offsets = [0, 64], sizes = [1, 32], strides = [1, 1]} : vector<1x128xf32> to vector<1x32xf32>
    %263 = arith.mulf %260, %227 : vector<1x32xf32>
    %264 = arith.mulf %259, %262 : vector<1x32xf32>
    %265 = arith.addf %263, %264 : vector<1x32xf32>
    %266 = math.tanh %265 : vector<1x32xf32>
    %267 = arith.mulf %261, %266 : vector<1x32xf32>
    %268 = tpu.concatenate %267, %248 in 1 : vector<1x32xf32>, vector<1x32xf32> -> vector<1x64xf32>
    %269 = arith.truncf %268 : vector<1x64xf32> to vector<1x64xbf16>
    %cst_44 = arith.constant dense<0.000000e+00> : vector<1x128xf32>
    %270 = tpu.matmul %269, %3, %cst_44 {dimension_numbers = #tpu.dot_dimension_numbers<[1], [0], [0], [1], [0, 0, 1, 1], [], []>} : vector<1x64xbf16>, vector<64x128xbf16>, vector<1x128xf32> -> vector<1x128xf32>
    %271 = arith.addf %270, %4 : vector<1x128xf32>
    %272 = arith.negf %271 : vector<1x128xf32>
    %273 = math.exp %272 : vector<1x128xf32>
    %cst_45 = arith.constant 1.000000e+00 : f32
    %274 = vector.broadcast %cst_45 : f32 to vector<1x128xf32>
    %275 = arith.addf %274, %273 : vector<1x128xf32>
    %276 = arith.divf %274, %275 : vector<1x128xf32>
    %277 = math.tanh %271 : vector<1x128xf32>
    %278 = vector.extract_strided_slice %276 {offsets = [0, 0], sizes = [1, 32], strides = [1, 1]} : vector<1x128xf32> to vector<1x32xf32>
    %279 = vector.extract_strided_slice %276 {offsets = [0, 32], sizes = [1, 32], strides = [1, 1]} : vector<1x128xf32> to vector<1x32xf32>
    %280 = vector.extract_strided_slice %276 {offsets = [0, 96], sizes = [1, 32], strides = [1, 1]} : vector<1x128xf32> to vector<1x32xf32>
    %281 = vector.extract_strided_slice %277 {offsets = [0, 64], sizes = [1, 32], strides = [1, 1]} : vector<1x128xf32> to vector<1x32xf32>
    %282 = arith.mulf %279, %246 : vector<1x32xf32>
    %283 = arith.mulf %278, %281 : vector<1x32xf32>
    %284 = arith.addf %282, %283 : vector<1x32xf32>
    %285 = math.tanh %284 : vector<1x32xf32>
    %286 = arith.mulf %280, %285 : vector<1x32xf32>
    %287 = vector.extract_strided_slice %20 {offsets = [7, 0], sizes = [1, 128], strides = [1, 1]} : vector<8x128xf32> to vector<1x128xf32>
    %288 = arith.truncf %267 : vector<1x32xf32> to vector<1x32xbf16>
    %cst_46 = arith.constant dense<0.000000e+00> : vector<1x128xf32>
    %289 = tpu.matmul %288, %1, %cst_46 {dimension_numbers = #tpu.dot_dimension_numbers<[1], [0], [0], [1], [0, 0, 1, 1], [], []>} : vector<1x32xbf16>, vector<32x128xbf16>, vector<1x128xf32> -> vector<1x128xf32>
    %290 = arith.addf %287, %289 : vector<1x128xf32>
    %291 = arith.negf %290 : vector<1x128xf32>
    %292 = math.exp %291 : vector<1x128xf32>
    %cst_47 = arith.constant 1.000000e+00 : f32
    %293 = vector.broadcast %cst_47 : f32 to vector<1x128xf32>
    %294 = arith.addf %293, %292 : vector<1x128xf32>
    %295 = arith.divf %293, %294 : vector<1x128xf32>
    %296 = math.tanh %290 : vector<1x128xf32>
    %297 = vector.extract_strided_slice %295 {offsets = [0, 0], sizes = [1, 32], strides = [1, 1]} : vector<1x128xf32> to vector<1x32xf32>
    %298 = vector.extract_strided_slice %295 {offsets = [0, 32], sizes = [1, 32], strides = [1, 1]} : vector<1x128xf32> to vector<1x32xf32>
    %299 = vector.extract_strided_slice %295 {offsets = [0, 96], sizes = [1, 32], strides = [1, 1]} : vector<1x128xf32> to vector<1x32xf32>
    %300 = vector.extract_strided_slice %296 {offsets = [0, 64], sizes = [1, 32], strides = [1, 1]} : vector<1x128xf32> to vector<1x32xf32>
    %301 = arith.mulf %298, %265 : vector<1x32xf32>
    %302 = arith.mulf %297, %300 : vector<1x32xf32>
    %303 = arith.addf %301, %302 : vector<1x32xf32>
    %304 = math.tanh %303 : vector<1x32xf32>
    %305 = arith.mulf %299, %304 : vector<1x32xf32>
    %306 = tpu.concatenate %305, %286 in 1 : vector<1x32xf32>, vector<1x32xf32> -> vector<1x64xf32>
    %307 = arith.truncf %306 : vector<1x64xf32> to vector<1x64xbf16>
    %cst_48 = arith.constant dense<0.000000e+00> : vector<1x128xf32>
    %308 = tpu.matmul %307, %3, %cst_48 {dimension_numbers = #tpu.dot_dimension_numbers<[1], [0], [0], [1], [0, 0, 1, 1], [], []>} : vector<1x64xbf16>, vector<64x128xbf16>, vector<1x128xf32> -> vector<1x128xf32>
    %309 = arith.addf %308, %4 : vector<1x128xf32>
    %310 = arith.negf %309 : vector<1x128xf32>
    %311 = math.exp %310 : vector<1x128xf32>
    %cst_49 = arith.constant 1.000000e+00 : f32
    %312 = vector.broadcast %cst_49 : f32 to vector<1x128xf32>
    %313 = arith.addf %312, %311 : vector<1x128xf32>
    %314 = arith.divf %312, %313 : vector<1x128xf32>
    %315 = math.tanh %309 : vector<1x128xf32>
    %316 = vector.extract_strided_slice %314 {offsets = [0, 0], sizes = [1, 32], strides = [1, 1]} : vector<1x128xf32> to vector<1x32xf32>
    %317 = vector.extract_strided_slice %314 {offsets = [0, 32], sizes = [1, 32], strides = [1, 1]} : vector<1x128xf32> to vector<1x32xf32>
    %318 = vector.extract_strided_slice %314 {offsets = [0, 96], sizes = [1, 32], strides = [1, 1]} : vector<1x128xf32> to vector<1x32xf32>
    %319 = vector.extract_strided_slice %315 {offsets = [0, 64], sizes = [1, 32], strides = [1, 1]} : vector<1x128xf32> to vector<1x32xf32>
    %320 = arith.mulf %317, %284 : vector<1x32xf32>
    %321 = arith.mulf %316, %319 : vector<1x32xf32>
    %322 = arith.addf %320, %321 : vector<1x32xf32>
    %323 = math.tanh %322 : vector<1x32xf32>
    %324 = arith.mulf %318, %323 : vector<1x32xf32>
    %c0_50 = arith.constant 0 : index
    %c0_51 = arith.constant 0 : index
    %325 = vector.load %arg7[%c0_50, %c0_51] : memref<2x32xf32, #tpu.memory_space<vmem>>, vector<1x32xf32>
    tpu.vector_store %arg7[%c0_50, %c0_51], %305 {strides = array<i32>} : memref<2x32xf32, #tpu.memory_space<vmem>>, vector<1x32xf32>,
    %c0_52 = arith.constant 0 : index
    %c0_53 = arith.constant 0 : index
    %326 = vector.load %arg8[%c0_52, %c0_53] : memref<2x32xf32, #tpu.memory_space<vmem>>, vector<1x32xf32>
    tpu.vector_store %arg8[%c0_52, %c0_53], %303 {strides = array<i32>} : memref<2x32xf32, #tpu.memory_space<vmem>>, vector<1x32xf32>,
    %c1 = arith.constant 1 : index
    %c0_54 = arith.constant 0 : index
    %327 = vector.load %arg7[%c1, %c0_54] : memref<2x32xf32, #tpu.memory_space<vmem>>, vector<1x32xf32>
    tpu.vector_store %arg7[%c1, %c0_54], %324 {strides = array<i32>} : memref<2x32xf32, #tpu.memory_space<vmem>>, vector<1x32xf32>,
    %c1_55 = arith.constant 1 : index
    %c0_56 = arith.constant 0 : index
    %328 = vector.load %arg8[%c1_55, %c0_56] : memref<2x32xf32, #tpu.memory_space<vmem>>, vector<1x32xf32>
    tpu.vector_store %arg8[%c1_55, %c0_56], %322 {strides = array<i32>} : memref<2x32xf32, #tpu.memory_space<vmem>>, vector<1x32xf32>,
    return
  }
}

</mosaic_0001>

<bundles_post_ra>
// kernel: tpu_custom_call.1
= control target key start
LH: loop header
LB: loop body
LE: loop exit
PB: predicated region body
PF: predicated region fallthrough
CT: control target
= control target key end

     0   :  { %14 = vsyncpa [#allocation3], 0  ;;  %vm69_vm0 = vcmask 1041408   ;;  %v1519_v3 = vmov 0   ;;  %s1867_s0 = inlined_call_operand.vmem [shape: s32[8,1], index: 0, kind: input, shape index: {}]   ;;  %s1868_s1 = inlined_call_operand.vmem [shape: f32[50,32], index: 1, kind: input, shape index: {}]   ;;  %s1869_s2 = inlined_call_operand.vmem [shape: bf16[32,128], index: 2, kind: input, shape index: {}]   ;;  %s1870_s3 = inlined_call_operand.vmem [shape: bf16[32,128], index: 3, kind: input, shape index: {}]   ;;  %s1871_s4 = inlined_call_operand.vmem [shape: f32[1,128], index: 4, kind: input, shape index: {}]   ;;  %s1872_s5 = inlined_call_operand.vmem [shape: bf16[64,128], index: 5, kind: input, shape index: {}]   ;;  %s1873_s6 = inlined_call_operand.vmem [shape: f32[1,128], index: 6, kind: input, shape index: {}]   ;;  %s1874_s7 = inlined_call_operand.hbm [shape: f32[2,32], index: 7, kind: output, shape index: {0}]   ;;  %s1875_s8 = inlined_call_operand.hbm [shape: f32[2,32], index: 8, kind: output, shape index: {1}]  }
   0x1   :  { %v49_v0 = vld [vmem:[%s1867_s0] sm:$0xff]  ;;  %v64_v1 = vld [vmem:[%s1868_s1 + $0x30] sm:$0x3]  ;;  %v63_v2 = vld [vmem:[%s1868_s1 + $0x28] sm:$0xff]  ;;  %1336 = vset.pattern.permute.xlu0 %v1519_v3 }
   0x2   :  { %1255 = vmatpush.msk.msra.mxu0 %vm69_vm0, %v64_v1  ;;  %53 = vperm.xlu0 %1336, %v49_v0   ;;  %v62_v4 = vld [vmem:[%s1868_s1 + $0x20] sm:$0xff] }
   0x3   :  { %15 = vsyncpa [#allocation5], 0  ;;  %v61_v5 = vld [vmem:[%s1868_s1 + $0x18] sm:$0xff]  ;;  %v60_v6 = vld [vmem:[%s1868_s1 + $0x10] sm:$0xff]  ;;  %v50_v12 = vlaneseq  ;;  %vm65_vm1 = vcmask 408576   ;;  %v1520_v15 = vmov 0.0  }
   0x4   :  { %83 = vmatpush.msra.mxu0 %v63_v2  ;;  %v59_v7 = vld [vmem:[%s1868_s1 + $0x8] sm:$0xff]  ;;  %v58_v8 = vld [vmem:[%s1868_s1] sm:$0xff]  ;;  %vm109_vm3 = vcmask 261120   ;;  %v1637_v47 = vld [vmem:[%s1872_s5 + $0x18] sm:$0xff]  ;;  %vm222_vm8 = vcmask 523264   ;;  %s1524_s16 = smov [#allocation4]  }
   0x5   :  { %v1598_v9 = vld [vmem:[%s1870_s3 + $0x8] sm:$0xff]  ;;  %v1607_v11 = vld [vmem:[%s1870_s3] sm:$0xff]  ;;  %v51_v13 = vand.u32 127, %v50_v12  ;;  %230 = vmatpush.bf16.msra.mxu3 %v1637_v47  ;;  %v1643_v48 = vld [vmem:[%s1872_s5 + $0x10] sm:$0xff]  ;;  %s1238_s17 = sshll.u32 %s1524_s16, 4  ;;  %s1240_s20 = sshll.u32 %s1875_s8, 4  ;;  %s1239_s17 = int_to_ptr.vmem [resolvable:$true] %s1238_s17  ;;  %s1241_s20 = int_to_ptr.hbm [resolvable:$true] %s1240_s20 }
   0x6   :  { %84 = vmatpush.msra.mxu0 %v62_v4  ;;  %v1322_v10 = vld [vmem:[%s1869_s2 + $0x8] sm:$0xff]  ;;  %147 = vmatpush.bf16.msra.mxu2 %v1598_v9  ;;  %v1321_v17 = vld [vmem:[%s1869_s2] sm:$0xff]  ;;  %s1521_s2 = smov 64   ;;  %s1525_s21 = smov [#allocation2]  }
   0x7   :  { %119 = vmatpush.bf16.msra.mxu1 %v1322_v10  ;;  %v1337_v22 = vld [vmem:[%s1871_s4] ss:$0 sm:$0xff]  ;;  %s1522_s4 = smov 32   ;;  %v1650_v49 = vld [vmem:[%s1872_s5 + $0x8] sm:$0xff]  ;;  %s1227_s22 = sshll.u32 %s1525_s21, 4  ;;  %s1228_s22 = int_to_ptr.vmem [resolvable:$true] %s1227_s22 }
   0x8   :  { %85 = vmatpush.msra.mxu0 %v61_v5  ;;  %v1660_v53 = vld [vmem:[%s1872_s5] sm:$0xff]  ;;  %s1229_s25 = sshll.u32 %s1874_s7, 4  ;;  %s1230_s25 = int_to_ptr.hbm [resolvable:$true] %s1229_s25 }
   0x9   :  { %231 = vmatpush.bf16.msra.mxu3 %v1643_v48  ;;  %v1684_v58 = vld [vmem:[%s1873_s6] sm:$0x1] }
   0xa   :  { %86 = vmatpush.msra.mxu0 %v60_v6  ;;  %148 = vmatpush.bf16.msra.mxu2 %v1607_v11 }
   0xb   :  { %120 = vmatpush.bf16.msra.mxu1 %v1321_v17 }
   0xc   :  { %87 = vmatpush.msra.mxu0 %v59_v7 }
   0xd   :  { %149 = vmatmul.bf16.vlgmr.msra.gmra.mxu2 %v1519_v3  ;;  %232 = vmatpush.bf16.msra.mxu3 %v1650_v49 }
   0xe   :  { %88 = vmatpush.msra.mxu0 %v58_v8  ;;  %422 = vmatpush.bf16.msrb.mxu2 %v1598_v9 }
   0xf   :  { %361 = vmatpush.bf16.msrb.mxu1 %v1637_v47 }
  0x10   :  { %289 = vmatpush.bf16.msrb.mxu0 %v1598_v9 }
  0x11   :  { %233 = vmatpush.bf16.msra.mxu3 %v1660_v53 }
  0x12   :  { %423 = vmatpush.bf16.msrb.mxu2 %v1607_v11 }
  0x13   :  { %362 = vmatpush.bf16.msrb.mxu1 %v1643_v48 }
  0x14   :  { %290 = vmatpush.bf16.msrb.mxu0 %v1607_v11 }
  0x15   :  { %493 = vmatpush.bf16.msrb.mxu3 %v1637_v47 }
  0x16   :  { %688 = vmatpush.bf16.msra.mxu2 %v1598_v9 }
  0x17   :  { %363 = vmatpush.bf16.msrb.mxu1 %v1650_v49 }
  0x19   :  { %494 = vmatpush.bf16.msrb.mxu3 %v1643_v48 }
  0x1a   :  { %689 = vmatpush.bf16.msra.mxu2 %v1607_v11 }
  0x1b   :  { %364 = vmatpush.bf16.msrb.mxu1 %v1660_v53 }
  0x1d   :  { %495 = vmatpush.bf16.msrb.mxu3 %v1650_v49 }
  0x21   :  { %496 = vmatpush.bf16.msrb.mxu3 %v1660_v53 }
  0x74   :  { %v54_v14 = vpop.permute.xlu0 %53 }
  0x75   :  { %vm55_vm2 = vcmp.eq.s32.totalorder %v51_v13, %v54_v14 }
  0x76   :  { %v1254_v16 = vsel %vm55_vm2, 1.0, %v1520_v15 }
  0x77   :  { %1256 = vmatmul.msk.f32.vlgmr.msra.gmra.mxu0 %vm65_vm1, %v1254_v16 }
  0x78   :  { %553 = vmatpush.bf16.msra.mxu0 %v1598_v9 }
  0x7c   :  { %554 = vmatpush.bf16.msra.mxu0 %v1607_v11 }
  0x90   :  { %v150_v18 = vpop.f32.mrf.mxu2 }
  0x98   :  { %v152_v19 = vpop.f32.mrf.mxu2 }
  0xf4   :  { %v90_v20 = vpop.f32.mrf.mxu0 }
  0xf5   :  { %v93_v21 = vpack.c.bf16 %v90_v20, %v90_v20 }
  0xf7   :  { %1265 = vmatmul.msk.bf16.vlgmr.msra.gmra.mxu1 %vm109_vm3, %v93_v21 }
  0xf8   :  { %626 = vmatpush.bf16.msra.mxu1 %v1637_v47 }
  0xfc   :  { %627 = vmatpush.bf16.msra.mxu1 %v1643_v48 }
 0x100   :  { %628 = vmatpush.bf16.msra.mxu1 %v1650_v49 }
 0x104   :  { %629 = vmatpush.bf16.msra.mxu1 %v1660_v53 }
 0x174   :  { %v122_v23 = vpop.f32.mrf.mxu1 }
 0x175   :  { %v1625_v24 = vadd.f32 %v1337_v22, %v122_v23 }
 0x177   :  { %v154_v25 = vadd.f32 %v150_v18, %v1625_v24 }
 0x179   :  { %1338 = vtanh.f32 %v154_v25  ;;  %v1274_v28 = vmul.f32 -1.442695, %v154_v25 }
 0x17b   :  { %1340 = vpow2.f32 %v1274_v28 }
 0x17c   :  { %v124_v26 = vpop.f32.mrf.mxu1 }
 0x17f   :  { %v1339_v27 = vpop.eup %1338 }
 0x180   :  { %177 = vrot.lane.b32.xlu0 %v1339_v27, %s1521_s2 }
 0x181   :  { %v1341_v29 = vpop.eup %1340 }
 0x182   :  { %v158_v30 = vadd.f32 1.0, %v1341_v29 }
 0x184   :  { %1342 = vrcp.f32 %v158_v30  ;;  %v170_v36 = vand.u32 2147483648, %v158_v30  ;;  %vm164_vm5 = vweird.f32 %v158_v30  ;;  %v168_v37 = vand.u32 2147483647, %v158_v30 }
 0x186   :  { %v171_v39 = vor.u32 1.1754944e-38, %v170_v36  ;;  %vm169_vm7 = vcmp.eq.f32.partialorder %v168_v37, 8.507059e+37 }
 0x18a   :  { %v1343_v31 = vpop.eup %1342 }
 0x18b   :  { %v160_v32 = vmul.f32 %v1343_v31, %v158_v30  ;;  %vm165_vm4 = vweird.f32 %v1343_v31 }
 0x18c   :  { %vm166_vm6 = vmor %vm164_vm5, %vm165_vm4 }
 0x18d   :  { %v161_v33 = vsub.f32 1.0, %v160_v32 }
 0x18f   :  { %v162_v34 = vmul.f32 %v1343_v31, %v161_v33 }
 0x191   :  { %v163_v35 = vadd.f32 %v1343_v31, %v162_v34 }
 0x193   :  { %v167_v38 = vsel %vm166_vm6, %v1343_v31, %v163_v35 }
 0x194   :  { %v172_v41 = vsel %vm169_vm7, %v171_v39, %v167_v38 }
 0x195   :  { %v175_v43 = vmul.f32 0.0, %v172_v41 }
 0x1f2   :  { %v178_v40 = vpop.permute.xlu0 %177 }
 0x1f3   :  { %v180_v42 = vmul.f32 %v178_v40, %v172_v41 }
 0x1f5   :  { %182 = vrot.lane.b32.xlu1 %v180_v42, %s1522_s4 }
 0x267   :  { %v183_v44 = vpop.permute.xlu1 %182 }
 0x268   :  { %v1630_v45 = vadd.f32 %v183_v44, %v175_v43 }
 0x26a   :  { %1344 = vtanh.f32 %v1630_v45  ;;  %v321_v37 = vrot.slane %v1630_v45, 7 }
 0x270   :  { %v1345_v46 = vpop.eup %1344 }
 0x271   :  { %188 = vrot.lane.b32.xlu1 %v1345_v46, %s1521_s2 }
 0x2e3   :  { %v189_v50 = vpop.permute.xlu1 %188 }
 0x2e4   :  { %v191_v51 = vmul.f32 %v189_v50, %v172_v41 }
 0x2e6   :  { %193 = vrot.lane.b32.xlu2 %v191_v51, %s1522_s4  ;;  %v276_v52 = vpack.c.bf16 %v191_v51, %v191_v51 }
 0x2ee   :  { %278 = vrot.lane.b32.xlu2 %v276_v52, %s1522_s4 }
 0x340   :  { %v194_v54 = vpop.permute.xlu2 %193 }
 0x341   :  { %v196_v55 = vsel %vm109_vm3, %v194_v54, 0.0 }
 0x342   :  { %v197_v56 = vpack.c.bf16 %v196_v55, %v196_v55 }
 0x344   :  { %1291 = vmatmul.msk.bf16.vlgmr.msra.gmra.mxu3 %vm222_vm8, %v197_v56 }
 0x345   :  { %759 = vmatpush.bf16.msra.mxu3 %v1637_v47 }
 0x348   :  { %v279_v57 = vpop.permute.xlu2 %278 }
 0x349   :  { %1293 = vmatmul.msk.bf16.vlgmr.msrb.gmra.mxu0 %vm109_vm3, %v279_v57  ;;  %760 = vmatpush.bf16.msra.mxu3 %v1643_v48 }
 0x34a   :  { %819 = vmatpush.bf16.msrb.mxu0 %v1598_v9 }
 0x34d   :  { %761 = vmatpush.bf16.msra.mxu3 %v1650_v49 }
 0x34e   :  { %820 = vmatpush.bf16.msrb.mxu0 %v1607_v11 }
 0x351   :  { %762 = vmatpush.bf16.msra.mxu3 %v1660_v53 }
 0x3c6   :  { %v292_v59 = vpop.f32.mrf.mxu0 }
 0x3c7   :  { %v297_v60 = vrot.slane %v292_v59, 7  ;;  %v235_v61 = vpop.f32.mrf.mxu3 }
 0x3c8   :  { %v236_v62 = vadd.f32 %v235_v61, %v1684_v58 }
 0x3c9   :  { %v299_v63 = vadd.f32 %v297_v60, %v1625_v24 }
 0x3ca   :  { %1346 = vtanh.f32 %v236_v62  ;;  %v1292_v4 = vmul.f32 -1.442695, %v236_v62 }
 0x3cb   :  { %1348 = vtanh.f32 %v299_v63  ;;  %v1294_v5 = vmul.f32 -1.442695, %v299_v63 }
 0x3cc   :  { %1350 = vpow2.f32 %v1292_v4 }
 0x3cd   :  { %1352 = vpow2.f32 %v1294_v5 }
 0x3ce   :  { %v294_v0 = vpop.f32.mrf.mxu0 }
 0x3cf   :  { %v237_v1 = vpop.f32.mrf.mxu3 }
 0x3d0   :  { %v1347_v2 = vpop.eup %1346 }
 0x3d1   :  { %v1349_v3 = vpop.eup %1348  ;;  %261 = vrot.lane.b32.xlu1 %v1347_v2, %s1521_s2 }
 0x3d2   :  { %325 = vrot.lane.b32.xlu0 %v1349_v3, %s1521_s2  ;;  %v1351_v6 = vpop.eup %1350 }
 0x3d3   :  { %v1353_v7 = vpop.eup %1352  ;;  %v242_v8 = vadd.f32 1.0, %v1351_v6 }
 0x3d4   :  { %v303_v10 = vadd.f32 1.0, %v1353_v7 }
 0x3d5   :  { %1354 = vrcp.f32 %v242_v8  ;;  %v254_v21 = vand.u32 2147483648, %v242_v8  ;;  %vm248_vm11 = vweird.f32 %v242_v8  ;;  %v252_v23 = vand.u32 2147483647, %v242_v8 }
 0x3d6   :  { %1356 = vrcp.f32 %v303_v10  ;;  %v315_v25 = vand.u32 2147483648, %v303_v10  ;;  %vm309_vm13 = vweird.f32 %v303_v10  ;;  %v313_v26 = vand.u32 2147483647, %v303_v10 }
 0x3d7   :  { %v255_v28 = vor.u32 1.1754944e-38, %v254_v21  ;;  %vm253_vm15 = vcmp.eq.f32.partialorder %v252_v23, 8.507059e+37 }
 0x3d8   :  { %v316_v30 = vor.u32 1.1754944e-38, %v315_v25  ;;  %vm314_vm0 = vcmp.eq.f32.partialorder %v313_v26, 8.507059e+37 }
 0x3db   :  { %v1355_v12 = vpop.eup %1354 }
 0x3dc   :  { %v1357_v13 = vpop.eup %1356  ;;  %v244_v14 = vmul.f32 %v1355_v12, %v242_v8  ;;  %vm249_vm9 = vweird.f32 %v1355_v12 }
 0x3dd   :  { %v305_v15 = vmul.f32 %v1357_v13, %v303_v10  ;;  %vm310_vm10 = vweird.f32 %v1357_v13  ;;  %vm250_vm12 = vmor %vm248_vm11, %vm249_vm9 }
 0x3de   :  { %v245_v16 = vsub.f32 1.0, %v244_v14  ;;  %vm311_vm14 = vmor %vm309_vm13, %vm310_vm10 }
 0x3df   :  { %v306_v17 = vsub.f32 1.0, %v305_v15 }
 0x3e0   :  { %v246_v18 = vmul.f32 %v1355_v12, %v245_v16 }
 0x3e1   :  { %v307_v19 = vmul.f32 %v1357_v13, %v306_v17 }
 0x3e2   :  { %v247_v20 = vadd.f32 %v1355_v12, %v246_v18 }
 0x3e3   :  { %v308_v22 = vadd.f32 %v1357_v13, %v307_v19 }
 0x3e4   :  { %v251_v27 = vsel %vm250_vm12, %v1355_v12, %v247_v20 }
 0x3e5   :  { %v312_v29 = vsel %vm311_vm14, %v1357_v13, %v308_v22  ;;  %v256_v32 = vsel %vm253_vm15, %v255_v28, %v251_v27 }
 0x3e6   :  { %v317_v35 = vsel %vm314_vm0, %v316_v30, %v312_v29  ;;  %v259_v42 = vmul.f32 0.0, %v256_v32 }
 0x3e7   :  { %v323_v38 = vmul.f32 %v321_v37, %v317_v35 }
 0x443   :  { %v262_v31 = vpop.permute.xlu1 %261 }
 0x444   :  { %v264_v33 = vmul.f32 %v262_v31, %v256_v32  ;;  %v326_v34 = vpop.permute.xlu0 %325 }
 0x445   :  { %v328_v36 = vmul.f32 %v326_v34, %v317_v35 }
 0x446   :  { %266 = vrot.lane.b32.xlu0 %v264_v33, %s1522_s4 }
 0x447   :  { %330 = vrot.lane.b32.xlu2 %v328_v36, %s1522_s4 }
 0x4a1   :  { %v331_v39 = vpop.permute.xlu2 %330 }
 0x4a2   :  { %v1693_v40 = vadd.f32 %v331_v39, %v323_v38 }
 0x4a4   :  { %1358 = vtanh.f32 %v1693_v40 }
 0x4aa   :  { %v1359_v41 = vpop.eup %1358 }
 0x4ab   :  { %336 = vrot.lane.b32.xlu1 %v1359_v41, %s1521_s2 }
 0x4b8   :  { %v267_v43 = vpop.permute.xlu0 %266 }
 0x4b9   :  { %v1697_v44 = vadd.f32 %v267_v43, %v259_v42 }
 0x4bb   :  { %1360 = vtanh.f32 %v1697_v44 }
 0x4c1   :  { %v1361_v46 = vpop.eup %1360 }
 0x4c2   :  { %272 = vrot.lane.b32.xlu2 %v1361_v46, %s1521_s2 }
 0x51c   :  { %v273_v50 = vpop.permute.xlu2 %272 }
 0x51d   :  { %v275_v45 = vmul.f32 %v273_v50, %v256_v32  ;;  %v337_v51 = vpop.permute.xlu1 %336 }
 0x51e   :  { %v339_v52 = vmul.f32 %v337_v51, %v317_v35  ;;  %v454_v51 = vrot.slane %v1693_v40, 7 }
 0x51f   :  { %v345_v54 = vrot.slane %v275_v45, 7 }
 0x520   :  { %v407_v55 = vpack.c.bf16 %v339_v52, %v339_v52  ;;  %341 = vrot.lane.b32.xlu1 %v339_v52, %s1522_s4 }
 0x521   :  { %346 = vrot.lane.b32.xlu2 %v345_v54, %s1521_s2 }
 0x522   :  { %v409_v56 = vshrl.u32 %v407_v55, 16 }
 0x524   :  { %411 = vrot.lane.b32.xlu0 %v409_v56, %s1522_s4 }
 0x57b   :  { %v347_v57 = vpop.permute.xlu2 %346 }
 0x592   :  { %v342_v59 = vpop.permute.xlu1 %341 }
 0x593   :  { %v349_v60 = vsel %vm109_vm3, %v342_v59, %v347_v57 }
 0x594   :  { %v350_v61 = vpack.c.bf16 %v349_v60, %v349_v60 }
 0x596   :  { %v352_v62 = vshrl.u32 %v350_v61, 16  ;;  %v412_v63 = vpop.permute.xlu0 %411 }
 0x597   :  { %1297 = vmatmul.msk.bf16.vlgmr.msrb.gmra.mxu2 %vm109_vm3, %v412_v63 }
 0x598   :  { %1295 = vmatmul.msk.bf16.vlgmr.msrb.gmra.mxu1 %vm222_vm8, %v352_v62  ;;  %954 = vmatpush.bf16.msrb.mxu2 %v1598_v9 }
 0x599   :  { %892 = vmatpush.bf16.msrb.mxu1 %v1637_v47 }
 0x59c   :  { %955 = vmatpush.bf16.msrb.mxu2 %v1607_v11 }
 0x59d   :  { %893 = vmatpush.bf16.msrb.mxu1 %v1643_v48 }
 0x5a1   :  { %894 = vmatpush.bf16.msrb.mxu1 %v1650_v49 }
 0x5a5   :  { %895 = vmatpush.bf16.msrb.mxu1 %v1660_v53 }
 0x615   :  { %v366_v0 = vpop.f32.mrf.mxu1 }
 0x616   :  { %v367_v1 = vadd.f32 %v366_v0, %v1684_v58 }
 0x618   :  { %1362 = vtanh.f32 %v367_v1  ;;  %v1296_v10 = vmul.f32 -1.442695, %v367_v1 }
 0x61a   :  { %v425_v2 = vpop.f32.mrf.mxu2 }
 0x61b   :  { %v430_v3 = vrot.slane %v425_v2, 6 }
 0x61d   :  { %v432_v4 = vadd.f32 %v430_v3, %v1625_v24  ;;  %v368_v5 = vpop.f32.mrf.mxu1 }
 0x61e   :  { %v1363_v6 = vpop.eup %1362 }
 0x61f   :  { %1364 = vtanh.f32 %v432_v4  ;;  %392 = vrot.lane.b32.xlu0 %v1363_v6, %s1521_s2  ;;  %v1298_v12 = vmul.f32 -1.442695, %v432_v4 }
 0x620   :  { %1366 = vpow2.f32 %v1296_v10 }
 0x621   :  { %1368 = vpow2.f32 %v1298_v12 }
 0x622   :  { %v427_v7 = vpop.f32.mrf.mxu2 }
 0x625   :  { %v1365_v8 = vpop.eup %1364 }
 0x626   :  { %458 = vrot.lane.b32.xlu1 %v1365_v8, %s1521_s2  ;;  %v1367_v13 = vpop.eup %1366 }
 0x627   :  { %v373_v14 = vadd.f32 1.0, %v1367_v13  ;;  %v1369_v15 = vpop.eup %1368 }
 0x628   :  { %v436_v16 = vadd.f32 1.0, %v1369_v15 }
 0x629   :  { %1370 = vrcp.f32 %v373_v14  ;;  %v385_v26 = vand.u32 2147483648, %v373_v14  ;;  %vm379_vm2 = vweird.f32 %v373_v14  ;;  %v383_v27 = vand.u32 2147483647, %v373_v14 }
 0x62a   :  { %1372 = vrcp.f32 %v436_v16  ;;  %v448_v35 = vand.u32 2147483648, %v436_v16  ;;  %vm442_vm7 = vweird.f32 %v436_v16  ;;  %v446_v36 = vand.u32 2147483647, %v436_v16 }
 0x62b   :  { %v386_v30 = vor.u32 1.1754944e-38, %v385_v26  ;;  %vm384_vm5 = vcmp.eq.f32.partialorder %v383_v27, 8.507059e+37 }
 0x62c   :  { %v449_v38 = vor.u32 1.1754944e-38, %v448_v35  ;;  %vm447_vm10 = vcmp.eq.f32.partialorder %v446_v36, 8.507059e+37 }
 0x62f   :  { %v1371_v17 = vpop.eup %1370 }
 0x630   :  { %v375_v18 = vmul.f32 %v1371_v17, %v373_v14  ;;  %v1373_v19 = vpop.eup %1372  ;;  %vm380_vm1 = vweird.f32 %v1371_v17 }
 0x631   :  { %v438_v21 = vmul.f32 %v1373_v19, %v436_v16  ;;  %vm381_vm4 = vmor %vm379_vm2, %vm380_vm1  ;;  %vm443_vm6 = vweird.f32 %v1373_v19 }
 0x632   :  { %v376_v20 = vsub.f32 1.0, %v375_v18  ;;  %vm444_vm9 = vmor %vm442_vm7, %vm443_vm6 }
 0x633   :  { %v439_v23 = vsub.f32 1.0, %v438_v21 }
 0x634   :  { %v377_v22 = vmul.f32 %v1371_v17, %v376_v20 }
 0x635   :  { %v440_v28 = vmul.f32 %v1373_v19, %v439_v23 }
 0x636   :  { %v378_v25 = vadd.f32 %v1371_v17, %v377_v22 }
 0x637   :  { %v441_v33 = vadd.f32 %v1373_v19, %v440_v28 }
 0x638   :  { %v382_v29 = vsel %vm381_vm4, %v1371_v17, %v378_v25 }
 0x639   :  { %v387_v31 = vsel %vm384_vm5, %v386_v30, %v382_v29  ;;  %v445_v37 = vsel %vm444_vm9, %v1373_v19, %v441_v33 }
 0x63a   :  { %v450_v41 = vsel %vm447_vm10, %v449_v38, %v445_v37  ;;  %v390_v43 = vmul.f32 %v387_v31, %v1697_v44 }
 0x63b   :  { %v456_v52 = vmul.f32 %v454_v51, %v450_v41 }
 0x691   :  { %v393_v32 = vpop.permute.xlu0 %392 }
 0x692   :  { %v395_v34 = vmul.f32 %v393_v32, %v387_v31 }
 0x694   :  { %397 = vrot.lane.b32.xlu2 %v395_v34, %s1522_s4 }
 0x698   :  { %v459_v39 = vpop.permute.xlu1 %458 }
 0x699   :  { %v461_v42 = vmul.f32 %v459_v39, %v450_v41 }
 0x69b   :  { %463 = vrot.lane.b32.xlu0 %v461_v42, %s1522_s4 }
 0x6ee   :  { %v398_v46 = vpop.permute.xlu2 %397 }
 0x6ef   :  { %v1720_v50 = vadd.f32 %v398_v46, %v390_v43 }
 0x6f1   :  { %1374 = vtanh.f32 %v1720_v50 }
 0x6f7   :  { %v1375_v45 = vpop.eup %1374 }
 0x6f8   :  { %403 = vrot.lane.b32.xlu1 %v1375_v45, %s1521_s2 }
 0x70d   :  { %v464_v54 = vpop.permute.xlu0 %463 }
 0x70e   :  { %v1725_v55 = vadd.f32 %v464_v54, %v456_v52 }
 0x710   :  { %1376 = vtanh.f32 %v1725_v55  ;;  %v585_v51 = vrot.slane %v1725_v55, 7 }
 0x716   :  { %v1377_v56 = vpop.eup %1376 }
 0x717   :  { %469 = vrot.lane.b32.xlu2 %v1377_v56, %s1521_s2 }
 0x76a   :  { %v404_v44 = vpop.permute.xlu1 %403 }
 0x76b   :  { %v406_v57 = vmul.f32 %v404_v44, %v387_v31 }
 0x76d   :  { %v478_v59 = vrot.slane %v406_v57, 6 }
 0x76f   :  { %479 = vrot.lane.b32.xlu1 %v478_v59, %s1521_s2 }
 0x771   :  { %v470_v60 = vpop.permute.xlu2 %469 }
 0x772   :  { %v472_v61 = vmul.f32 %v470_v60, %v450_v41 }
 0x774   :  { %v539_v62 = vpack.c.bf16 %v472_v61, %v472_v61  ;;  %474 = vrot.lane.b32.xlu0 %v472_v61, %s1522_s4 }
 0x776   :  { %v541_v40 = vrot.slane %v539_v62, 1 }
 0x778   :  { %542 = vrot.lane.b32.xlu2 %v541_v40, %s1522_s4 }
 0x7d2   :  { %v543_v63 = vpop.permute.xlu2 %542 }
 0x7d3   :  { %1301 = vmatmul.msk.bf16.vlgmr.msra.gmra.mxu0 %vm109_vm3, %v543_v63 }
 0x7d4   :  { %1085 = vmatpush.bf16.msra.mxu0 %v1598_v9 }
 0x7d8   :  { %1086 = vmatpush.bf16.msra.mxu0 %v1607_v11 }
 0x7e1   :  { %v480_v0 = vpop.permute.xlu1 %479 }
 0x7e6   :  { %v475_v1 = vpop.permute.xlu0 %474 }
 0x7e7   :  { %v482_v2 = vsel %vm109_vm3, %v475_v1, %v480_v0 }
 0x7e8   :  { %v483_v3 = vpack.c.bf16 %v482_v2, %v482_v2 }
 0x7ea   :  { %v485_v4 = vrot.slane %v483_v3, 1 }
 0x7ec   :  { %1299 = vmatmul.msk.bf16.vlgmr.msrb.gmra.mxu3 %vm222_vm8, %v485_v4 }
 0x7ed   :  { %1025 = vmatpush.bf16.msrb.mxu3 %v1637_v47 }
 0x7f1   :  { %1026 = vmatpush.bf16.msrb.mxu3 %v1643_v48 }
 0x7f5   :  { %1027 = vmatpush.bf16.msrb.mxu3 %v1650_v49 }
 0x7f9   :  { %1028 = vmatpush.bf16.msrb.mxu3 %v1660_v53 }
 0x850   :  { %v556_v5 = vpop.f32.mrf.mxu0 }
 0x851   :  { %v561_v9 = vrot.slane %v556_v5, 5 }
 0x853   :  { %v563_v11 = vadd.f32 %v561_v9, %v1625_v24 }
 0x855   :  { %1378 = vtanh.f32 %v563_v11  ;;  %v1302_v14 = vmul.f32 -1.442695, %v563_v11 }
 0x858   :  { %v558_v6 = vpop.f32.mrf.mxu0 }
 0x85b   :  { %v1379_v7 = vpop.eup %1378 }
 0x85c   :  { %589 = vrot.lane.b32.xlu0 %v1379_v7, %s1521_s2 }
 0x86f   :  { %v498_v8 = vpop.f32.mrf.mxu3 }
 0x870   :  { %v499_v10 = vadd.f32 %v498_v8, %v1684_v58 }
 0x872   :  { %1380 = vtanh.f32 %v499_v10  ;;  %v1300_v19 = vmul.f32 -1.442695, %v499_v10 }
 0x873   :  { %1382 = vpow2.f32 %v1302_v14 }
 0x877   :  { %v500_v12 = vpop.f32.mrf.mxu3 }
 0x878   :  { %v1381_v13 = vpop.eup %1380 }
 0x879   :  { %524 = vrot.lane.b32.xlu1 %v1381_v13, %s1521_s2  ;;  %v1383_v15 = vpop.eup %1382 }
 0x87a   :  { %v567_v16 = vadd.f32 1.0, %v1383_v15 }
 0x87c   :  { %1384 = vrcp.f32 %v567_v16  ;;  %v579_v25 = vand.u32 2147483648, %v567_v16  ;;  %vm573_vm12 = vweird.f32 %v567_v16  ;;  %v577_v26 = vand.u32 2147483647, %v567_v16 }
 0x87d   :  { %1386 = vpow2.f32 %v1300_v19 }
 0x87e   :  { %v580_v29 = vor.u32 1.1754944e-38, %v579_v25  ;;  %vm578_vm14 = vcmp.eq.f32.partialorder %v577_v26, 8.507059e+37 }
 0x882   :  { %v1385_v17 = vpop.eup %1384 }
 0x883   :  { %v569_v18 = vmul.f32 %v1385_v17, %v567_v16  ;;  %vm574_vm11 = vweird.f32 %v1385_v17  ;;  %v1387_v23 = vpop.eup %1386 }
 0x884   :  { %vm575_vm13 = vmor %vm573_vm12, %vm574_vm11  ;;  %v505_v27 = vadd.f32 1.0, %v1387_v23 }
 0x885   :  { %v570_v20 = vsub.f32 1.0, %v569_v18 }
 0x886   :  { %1388 = vrcp.f32 %v505_v27  ;;  %v517_v38 = vand.u32 2147483648, %v505_v27  ;;  %vm511_vm0 = vweird.f32 %v505_v27  ;;  %v515_v39 = vand.u32 2147483647, %v505_v27 }
 0x887   :  { %v571_v21 = vmul.f32 %v1385_v17, %v570_v20 }
 0x888   :  { %v518_v42 = vor.u32 1.1754944e-38, %v517_v38  ;;  %vm516_vm2 = vcmp.eq.f32.partialorder %v515_v39, 8.507059e+37 }
 0x889   :  { %v572_v22 = vadd.f32 %v1385_v17, %v571_v21 }
 0x88b   :  { %v576_v28 = vsel %vm575_vm13, %v1385_v17, %v572_v22 }
 0x88c   :  { %v581_v31 = vsel %vm578_vm14, %v580_v29, %v576_v28  ;;  %v1389_v33 = vpop.eup %1388 }
 0x88d   :  { %v507_v34 = vmul.f32 %v1389_v33, %v505_v27  ;;  %vm512_vm15 = vweird.f32 %v1389_v33  ;;  %v587_v52 = vmul.f32 %v585_v51, %v581_v31 }
 0x88e   :  { %vm513_vm1 = vmor %vm511_vm0, %vm512_vm15 }
 0x88f   :  { %v508_v35 = vsub.f32 1.0, %v507_v34 }
 0x891   :  { %v509_v36 = vmul.f32 %v1389_v33, %v508_v35 }
 0x893   :  { %v510_v37 = vadd.f32 %v1389_v33, %v509_v36 }
 0x895   :  { %v514_v41 = vsel %vm513_vm1, %v1389_v33, %v510_v37 }
 0x896   :  { %v519_v46 = vsel %vm516_vm2, %v518_v42, %v514_v41 }
 0x897   :  { %v522_v57 = vmul.f32 %v519_v46, %v1720_v50 }
 0x8ce   :  { %v590_v30 = vpop.permute.xlu0 %589 }
 0x8cf   :  { %v592_v32 = vmul.f32 %v590_v30, %v581_v31 }
 0x8d1   :  { %594 = vrot.lane.b32.xlu2 %v592_v32, %s1522_s4 }
 0x8eb   :  { %v525_v43 = vpop.permute.xlu1 %524 }
 0x8ec   :  { %v527_v45 = vmul.f32 %v525_v43, %v519_v46 }
 0x8ee   :  { %529 = vrot.lane.b32.xlu0 %v527_v45, %s1522_s4 }
 0x92b   :  { %v595_v54 = vpop.permute.xlu2 %594 }
 0x92c   :  { %v1748_v56 = vadd.f32 %v595_v54, %v587_v52 }
 0x92e   :  { %1390 = vtanh.f32 %v1748_v56  ;;  %v720_v52 = vrot.slane %v1748_v56, 7 }
 0x934   :  { %v1391_v44 = vpop.eup %1390 }
 0x935   :  { %600 = vrot.lane.b32.xlu1 %v1391_v44, %s1521_s2 }
 0x960   :  { %v530_v59 = vpop.permute.xlu0 %529 }
 0x961   :  { %v1753_v60 = vadd.f32 %v530_v59, %v522_v57 }
 0x963   :  { %1392 = vtanh.f32 %v1753_v60 }
 0x969   :  { %v1393_v61 = vpop.eup %1392 }
 0x96a   :  { %535 = vrot.lane.b32.xlu2 %v1393_v61, %s1521_s2 }
 0x9a7   :  { %v601_v55 = vpop.permute.xlu1 %600 }
 0x9a8   :  { %v603_v62 = vmul.f32 %v601_v55, %v581_v31 }
 0x9aa   :  { %v672_v40 = vpack.c.bf16 %v603_v62, %v603_v62  ;;  %605 = vrot.lane.b32.xlu0 %v603_v62, %s1522_s4 }
 0x9ac   :  { %v674_v63 = vshrl.u32 %v672_v40, 16 }
 0x9ae   :  { %v676_v0 = vrot.slane %v674_v63, 1 }
 0x9b0   :  { %677 = vrot.lane.b32.xlu2 %v676_v0, %s1522_s4 }
 0x9c4   :  { %v536_v1 = vpop.permute.xlu2 %535 }
 0x9c5   :  { %v538_v2 = vmul.f32 %v536_v1, %v519_v46 }
 0x9c7   :  { %v609_v50 = vrot.slane %v538_v2, 5 }
 0x9c9   :  { %610 = vrot.lane.b32.xlu1 %v609_v50, %s1521_s2 }
 0xa0a   :  { %v678_v3 = vpop.permute.xlu2 %677 }
 0xa0b   :  { %1305 = vmatmul.msk.bf16.vlgmr.msra.gmra.mxu2 %vm109_vm3, %v678_v3 }
 0xa1c   :  { %v606_v4 = vpop.permute.xlu0 %605 }
 0xa3b   :  { %v611_v5 = vpop.permute.xlu1 %610 }
 0xa3c   :  { %v613_v9 = vsel %vm109_vm3, %v606_v4, %v611_v5 }
 0xa3d   :  { %v614_v11 = vpack.c.bf16 %v613_v9, %v613_v9 }
 0xa3f   :  { %v616_v6 = vshrl.u32 %v614_v11, 16 }
 0xa41   :  { %v618_v7 = vrot.slane %v616_v6, 1 }
 0xa43   :  { %1303 = vmatmul.msk.bf16.vlgmr.msra.gmra.mxu1 %vm222_vm8, %v618_v7 }
 0xa44   :  { %1158 = vmatpush.bf16.msra.mxu1 %v1637_v47 }
 0xa48   :  { %1159 = vmatpush.bf16.msra.mxu1 %v1643_v48 }
 0xa4c   :  { %1160 = vmatpush.bf16.msra.mxu1 %v1650_v49 }
 0xa50   :  { %1161 = vmatpush.bf16.msra.mxu1 %v1660_v53 }
 0xa8e   :  { %v691_v8 = vpop.f32.mrf.mxu2 }
 0xa8f   :  { %v696_v10 = vrot.slane %v691_v8, 4 }
 0xa91   :  { %v698_v12 = vadd.f32 %v696_v10, %v1625_v24 }
 0xa93   :  { %1394 = vtanh.f32 %v698_v12  ;;  %v1306_v48 = vmul.f32 -1.442695, %v698_v12 }
 0xa96   :  { %v693_v13 = vpop.f32.mrf.mxu2 }
 0xa99   :  { %v1395_v14 = vpop.eup %1394 }
 0xa9a   :  { %724 = vrot.lane.b32.xlu1 %v1395_v14, %s1521_s2 }
 0xac0   :  { %v631_v15 = vpop.f32.mrf.mxu1 }
 0xac1   :  { %v632_v16 = vadd.f32 %v631_v15, %v1684_v58 }
 0xac3   :  { %1396 = vtanh.f32 %v632_v16  ;;  %v1304_v31 = vmul.f32 -1.442695, %v632_v16 }
 0xac4   :  { %1398 = vpow2.f32 %v1306_v48 }
 0xac8   :  { %v633_v47 = vpop.f32.mrf.mxu1 }
 0xac9   :  { %v1397_v17 = vpop.eup %1396 }
 0xaca   :  { %657 = vrot.lane.b32.xlu0 %v1397_v17, %s1521_s2  ;;  %v1399_v49 = vpop.eup %1398 }
 0xacb   :  { %v702_v53 = vadd.f32 1.0, %v1399_v49 }
 0xacd   :  { %1400 = vrcp.f32 %v702_v53  ;;  %v714_v23 = vand.u32 2147483648, %v702_v53  ;;  %vm708_vm5 = vweird.f32 %v702_v53  ;;  %v712_v25 = vand.u32 2147483647, %v702_v53 }
 0xace   :  { %1402 = vpow2.f32 %v1304_v31 }
 0xacf   :  { %v715_v27 = vor.u32 1.1754944e-38, %v714_v23  ;;  %vm713_vm7 = vcmp.eq.f32.partialorder %v712_v25, 8.507059e+37 }
 0xad3   :  { %v1401_v18 = vpop.eup %1400 }
 0xad4   :  { %v704_v19 = vmul.f32 %v1401_v18, %v702_v53  ;;  %vm709_vm4 = vweird.f32 %v1401_v18  ;;  %v1403_v32 = vpop.eup %1402 }
 0xad5   :  { %vm710_vm6 = vmor %vm708_vm5, %vm709_vm4  ;;  %v638_v33 = vadd.f32 1.0, %v1403_v32 }
 0xad6   :  { %v705_v20 = vsub.f32 1.0, %v704_v19 }
 0xad7   :  { %1404 = vrcp.f32 %v638_v33  ;;  %v650_v39 = vand.u32 2147483648, %v638_v33  ;;  %vm644_vm10 = vweird.f32 %v638_v33  ;;  %v648_v41 = vand.u32 2147483647, %v638_v33 }
 0xad8   :  { %v706_v21 = vmul.f32 %v1401_v18, %v705_v20 }
 0xad9   :  { %v651_v43 = vor.u32 1.1754944e-38, %v650_v39  ;;  %vm649_vm12 = vcmp.eq.f32.partialorder %v648_v41, 8.507059e+37 }
 0xada   :  { %v707_v22 = vadd.f32 %v1401_v18, %v706_v21 }
 0xadc   :  { %v711_v26 = vsel %vm710_vm6, %v1401_v18, %v707_v22 }
 0xadd   :  { %v716_v28 = vsel %vm713_vm7, %v715_v27, %v711_v26  ;;  %v1405_v34 = vpop.eup %1404 }
 0xade   :  { %v640_v35 = vmul.f32 %v1405_v34, %v638_v33  ;;  %vm645_vm9 = vweird.f32 %v1405_v34  ;;  %v722_v54 = vmul.f32 %v720_v52, %v716_v28 }
 0xadf   :  { %vm646_vm11 = vmor %vm644_vm10, %vm645_vm9 }
 0xae0   :  { %v641_v36 = vsub.f32 1.0, %v640_v35 }
 0xae2   :  { %v642_v37 = vmul.f32 %v1405_v34, %v641_v36 }
 0xae4   :  { %v643_v38 = vadd.f32 %v1405_v34, %v642_v37 }
 0xae6   :  { %v647_v42 = vsel %vm646_vm11, %v1405_v34, %v643_v38 }
 0xae7   :  { %v652_v45 = vsel %vm649_vm12, %v651_v43, %v647_v42 }
 0xae8   :  { %v655_v61 = vmul.f32 %v652_v45, %v1753_v60 }
 0xb0c   :  { %v725_v29 = vpop.permute.xlu1 %724 }
 0xb0d   :  { %v727_v30 = vmul.f32 %v725_v29, %v716_v28 }
 0xb0f   :  { %729 = vrot.lane.b32.xlu0 %v727_v30, %s1522_s4 }
 0xb3c   :  { %v658_v46 = vpop.permute.xlu0 %657 }
 0xb3d   :  { %v660_v51 = vmul.f32 %v658_v46, %v652_v45 }
 0xb3f   :  { %662 = vrot.lane.b32.xlu2 %v660_v51, %s1522_s4 }
 0xb81   :  { %v730_v44 = vpop.permute.xlu0 %729 }
 0xb82   :  { %v1774_v57 = vadd.f32 %v730_v44, %v722_v54 }
 0xb84   :  { %1406 = vtanh.f32 %v1774_v57  ;;  %v851_v51 = vrot.slane %v1774_v57, 7 }
 0xb8a   :  { %v1407_v59 = vpop.eup %1406 }
 0xb8b   :  { %735 = vrot.lane.b32.xlu2 %v1407_v59, %s1521_s2 }
 0xb99   :  { %v663_v55 = vpop.permute.xlu2 %662 }
 0xb9a   :  { %v1779_v62 = vadd.f32 %v663_v55, %v655_v61 }
 0xb9c   :  { %1408 = vtanh.f32 %v1779_v62 }
 0xba2   :  { %v1409_v40 = vpop.eup %1408 }
 0xba3   :  { %668 = vrot.lane.b32.xlu1 %v1409_v40, %s1521_s2 }
 0xbe5   :  { %v736_v56 = vpop.permute.xlu2 %735 }
 0xbe6   :  { %v738_v63 = vmul.f32 %v736_v56, %v716_v28 }
 0xbe8   :  { %v805_v0 = vpack.c.bf16 %v738_v63, %v738_v63  ;;  %740 = vrot.lane.b32.xlu0 %v738_v63, %s1522_s4 }
 0xbea   :  { %v807_v1 = vrot.slane %v805_v0, 2 }
 0xbec   :  { %808 = vrot.lane.b32.xlu2 %v807_v1, %s1522_s4 }
 0xc15   :  { %v669_v2 = vpop.permute.xlu1 %668 }
 0xc16   :  { %v671_v50 = vmul.f32 %v669_v2, %v652_v45 }
 0xc18   :  { %v744_v3 = vrot.slane %v671_v50, 4 }
 0xc1a   :  { %745 = vrot.lane.b32.xlu1 %v744_v3, %s1521_s2 }
 0xc46   :  { %v809_v60 = vpop.permute.xlu2 %808 }
 0xc47   :  { %1309 = vmatmul.msk.bf16.vlgmr.msrb.gmra.mxu0 %vm109_vm3, %v809_v60 }
 0xc5a   :  { %v741_v4 = vpop.permute.xlu0 %740 }
 0xc8c   :  { %v746_v5 = vpop.permute.xlu1 %745 }
 0xc8d   :  { %v748_v9 = vsel %vm109_vm3, %v741_v4, %v746_v5 }
 0xc8e   :  { %v749_v11 = vpack.c.bf16 %v748_v9, %v748_v9 }
 0xc90   :  { %v751_v6 = vrot.slane %v749_v11, 2 }
 0xc92   :  { %1307 = vmatmul.msk.bf16.vlgmr.msra.gmra.mxu3 %vm222_vm8, %v751_v6 }
 0xcc4   :  { %v822_v7 = vpop.f32.mrf.mxu0 }
 0xcc5   :  { %v827_v8 = vrot.slane %v822_v7, 3 }
 0xcc7   :  { %v829_v10 = vadd.f32 %v827_v8, %v1625_v24 }
 0xcc9   :  { %1410 = vtanh.f32 %v829_v10  ;;  %v1310_v14 = vmul.f32 -1.442695, %v829_v10 }
 0xccc   :  { %v824_v12 = vpop.f32.mrf.mxu0 }
 0xccf   :  { %v1411_v13 = vpop.eup %1410 }
 0xcd0   :  { %855 = vrot.lane.b32.xlu0 %v1411_v13, %s1521_s2 }
 0xd15   :  { %v764_v15 = vpop.f32.mrf.mxu3 }
 0xd16   :  { %v765_v16 = vadd.f32 %v764_v15, %v1684_v58 }
 0xd18   :  { %1412 = vtanh.f32 %v765_v16  ;;  %v1308_v30 = vmul.f32 -1.442695, %v765_v16 }
 0xd19   :  { %1414 = vpow2.f32 %v1310_v14 }
 0xd1d   :  { %v766_v47 = vpop.f32.mrf.mxu3 }
 0xd1e   :  { %v1413_v17 = vpop.eup %1412 }
 0xd1f   :  { %v1415_v48 = vpop.eup %1414  ;;  %790 = vrot.lane.b32.xlu1 %v1413_v17, %s1521_s2 }
 0xd20   :  { %v833_v49 = vadd.f32 1.0, %v1415_v48 }
 0xd22   :  { %1416 = vrcp.f32 %v833_v49  ;;  %v845_v22 = vand.u32 2147483648, %v833_v49  ;;  %vm839_vm14 = vweird.f32 %v833_v49  ;;  %v843_v23 = vand.u32 2147483647, %v833_v49 }
 0xd23   :  { %1418 = vpow2.f32 %v1308_v30 }
 0xd24   :  { %v846_v26 = vor.u32 1.1754944e-38, %v845_v22  ;;  %vm844_vm0 = vcmp.eq.f32.partialorder %v843_v23, 8.507059e+37 }
 0xd28   :  { %v1417_v53 = vpop.eup %1416 }
 0xd29   :  { %v835_v18 = vmul.f32 %v1417_v53, %v833_v49  ;;  %vm840_vm13 = vweird.f32 %v1417_v53  ;;  %v1419_v31 = vpop.eup %1418 }
 0xd2a   :  { %vm841_vm15 = vmor %vm839_vm14, %vm840_vm13  ;;  %v771_v32 = vadd.f32 1.0, %v1419_v31 }
 0xd2b   :  { %v836_v19 = vsub.f32 1.0, %v835_v18 }
 0xd2c   :  { %1420 = vrcp.f32 %v771_v32  ;;  %v783_v38 = vand.u32 2147483648, %v771_v32  ;;  %vm777_vm2 = vweird.f32 %v771_v32  ;;  %v781_v39 = vand.u32 2147483647, %v771_v32 }
 0xd2d   :  { %v837_v20 = vmul.f32 %v1417_v53, %v836_v19 }
 0xd2e   :  { %v784_v42 = vor.u32 1.1754944e-38, %v783_v38  ;;  %vm782_vm5 = vcmp.eq.f32.partialorder %v781_v39, 8.507059e+37 }
 0xd2f   :  { %v838_v21 = vadd.f32 %v1417_v53, %v837_v20 }
 0xd31   :  { %v842_v25 = vsel %vm841_vm15, %v1417_v53, %v838_v21 }
 0xd32   :  { %v847_v28 = vsel %vm844_vm0, %v846_v26, %v842_v25  ;;  %v1421_v33 = vpop.eup %1420 }
 0xd33   :  { %v773_v34 = vmul.f32 %v1421_v33, %v771_v32  ;;  %vm778_vm1 = vweird.f32 %v1421_v33  ;;  %v853_v52 = vmul.f32 %v851_v51, %v847_v28 }
 0xd34   :  { %vm779_vm4 = vmor %vm777_vm2, %vm778_vm1 }
 0xd35   :  { %v774_v35 = vsub.f32 1.0, %v773_v34 }
 0xd37   :  { %v775_v36 = vmul.f32 %v1421_v33, %v774_v35 }
 0xd39   :  { %v776_v37 = vadd.f32 %v1421_v33, %v775_v36 }
 0xd3b   :  { %v780_v41 = vsel %vm779_vm4, %v1421_v33, %v776_v37 }
 0xd3c   :  { %v785_v46 = vsel %vm782_vm5, %v784_v42, %v780_v41 }
 0xd3d   :  { %v788_v61 = vmul.f32 %v785_v46, %v1779_v62 }
 0xd42   :  { %v856_v27 = vpop.permute.xlu0 %855 }
 0xd43   :  { %v858_v29 = vmul.f32 %v856_v27, %v847_v28 }
 0xd45   :  { %860 = vrot.lane.b32.xlu2 %v858_v29, %s1522_s4 }
 0xd91   :  { %v791_v43 = vpop.permute.xlu1 %790 }
 0xd92   :  { %v793_v45 = vmul.f32 %v791_v43, %v785_v46 }
 0xd94   :  { %795 = vrot.lane.b32.xlu0 %v793_v45, %s1522_s4 }
 0xd9f   :  { %v861_v54 = vpop.permute.xlu2 %860 }
 0xda0   :  { %v1796_v44 = vadd.f32 %v861_v54, %v853_v52 }
 0xda2   :  { %1422 = vtanh.f32 %v1796_v44  ;;  %v986_v51 = vrot.slane %v1796_v44, 7 }
 0xda8   :  { %v1423_v59 = vpop.eup %1422 }
 0xda9   :  { %866 = vrot.lane.b32.xlu1 %v1423_v59, %s1521_s2 }
 0xe06   :  { %v796_v55 = vpop.permute.xlu0 %795 }
 0xe07   :  { %v1801_v40 = vadd.f32 %v796_v55, %v788_v61 }
 0xe09   :  { %1424 = vtanh.f32 %v1801_v40 }
 0xe0f   :  { %v1425_v56 = vpop.eup %1424 }
 0xe10   :  { %801 = vrot.lane.b32.xlu2 %v1425_v56, %s1521_s2 }
 0xe1b   :  { %v867_v57 = vpop.permute.xlu1 %866 }
 0xe1c   :  { %v869_v63 = vmul.f32 %v867_v57, %v847_v28 }
 0xe1e   :  { %v938_v0 = vpack.c.bf16 %v869_v63, %v869_v63  ;;  %871 = vrot.lane.b32.xlu0 %v869_v63, %s1522_s4 }
 0xe20   :  { %v940_v1 = vshrl.u32 %v938_v0, 16 }
 0xe22   :  { %v942_v2 = vrot.slane %v940_v1, 2 }
 0xe24   :  { %943 = vrot.lane.b32.xlu2 %v942_v2, %s1522_s4 }
 0xe6a   :  { %v802_v50 = vpop.permute.xlu2 %801 }
 0xe6b   :  { %v804_v3 = vmul.f32 %v802_v50, %v785_v46 }
 0xe6d   :  { %v875_v62 = vrot.slane %v804_v3, 3 }
 0xe6f   :  { %876 = vrot.lane.b32.xlu1 %v875_v62, %s1521_s2 }
 0xe7e   :  { %v944_v60 = vpop.permute.xlu2 %943 }
 0xe7f   :  { %1313 = vmatmul.msk.bf16.vlgmr.msrb.gmra.mxu2 %vm109_vm3, %v944_v60 }
 0xe90   :  { %v872_v4 = vpop.permute.xlu0 %871 }
 0xee1   :  { %v877_v5 = vpop.permute.xlu1 %876 }
 0xee2   :  { %v879_v9 = vsel %vm109_vm3, %v872_v4, %v877_v5 }
 0xee3   :  { %v880_v11 = vpack.c.bf16 %v879_v9, %v879_v9 }
 0xee5   :  { %v882_v6 = vshrl.u32 %v880_v11, 16 }
 0xee7   :  { %v884_v7 = vrot.slane %v882_v6, 2 }
 0xee9   :  { %1311 = vmatmul.msk.bf16.vlgmr.msrb.gmra.mxu1 %vm222_vm8, %v884_v7 }
 0xf02   :  { %v957_v8 = vpop.f32.mrf.mxu2 }
 0xf03   :  { %v962_v10 = vrot.slane %v957_v8, 2 }
 0xf05   :  { %v964_v12 = vadd.f32 %v962_v10, %v1625_v24 }
 0xf07   :  { %1426 = vtanh.f32 %v964_v12  ;;  %v1314_v15 = vmul.f32 -1.442695, %v964_v12 }
 0xf09   :  { %1428 = vpow2.f32 %v1314_v15 }
 0xf0a   :  { %v959_v13 = vpop.f32.mrf.mxu2 }
 0xf0d   :  { %v1427_v14 = vpop.eup %1426 }
 0xf0e   :  { %990 = vrot.lane.b32.xlu1 %v1427_v14, %s1521_s2 }
 0xf0f   :  { %v1429_v16 = vpop.eup %1428 }
 0xf10   :  { %v968_v47 = vadd.f32 1.0, %v1429_v16 }
 0xf12   :  { %1430 = vrcp.f32 %v968_v47  ;;  %v980_v23 = vand.u32 2147483648, %v968_v47  ;;  %vm974_vm7 = vweird.f32 %v968_v47  ;;  %v978_v25 = vand.u32 2147483647, %v968_v47 }
 0xf14   :  { %v981_v27 = vor.u32 1.1754944e-38, %v980_v23  ;;  %vm979_vm10 = vcmp.eq.f32.partialorder %v978_v25, 8.507059e+37 }
 0xf18   :  { %v1431_v49 = vpop.eup %1430 }
 0xf19   :  { %v970_v53 = vmul.f32 %v1431_v49, %v968_v47  ;;  %vm975_vm6 = vweird.f32 %v1431_v49 }
 0xf1a   :  { %vm976_vm9 = vmor %vm974_vm7, %vm975_vm6 }
 0xf1b   :  { %v971_v20 = vsub.f32 1.0, %v970_v53 }
 0xf1d   :  { %v972_v21 = vmul.f32 %v1431_v49, %v971_v20 }
 0xf1f   :  { %v973_v22 = vadd.f32 %v1431_v49, %v972_v21 }
 0xf21   :  { %v977_v26 = vsel %vm976_vm9, %v1431_v49, %v973_v22  ;;  %v1838_v49 = vld [vmem:[%s1873_s6] sm:$0x1]  ;;  %vm1204_vm9 = vcmask 261127   ;;  %s1523_s6 = smov 96  }
 0xf22   :  { %v982_v28 = vsel %vm979_vm10, %v981_v27, %v977_v26 }
 0xf23   :  { %v988_v52 = vmul.f32 %v986_v51, %v982_v28 }
 0xf66   :  { %v897_v17 = vpop.f32.mrf.mxu1 }
 0xf67   :  { %v898_v48 = vadd.f32 %v897_v17, %v1684_v58 }
 0xf69   :  { %1432 = vtanh.f32 %v898_v48  ;;  %v1312_v30 = vmul.f32 -1.442695, %v898_v48 }
 0xf6b   :  { %1434 = vpow2.f32 %v1312_v30 }
 0xf6e   :  { %v899_v18 = vpop.f32.mrf.mxu1 }
 0xf6f   :  { %v1433_v19 = vpop.eup %1432 }
 0xf70   :  { %923 = vrot.lane.b32.xlu0 %v1433_v19, %s1521_s2 }
 0xf71   :  { %v1435_v31 = vpop.eup %1434 }
 0xf72   :  { %v904_v32 = vadd.f32 1.0, %v1435_v31 }
 0xf74   :  { %1436 = vrcp.f32 %v904_v32  ;;  %v916_v38 = vand.u32 2147483648, %v904_v32  ;;  %vm910_vm12 = vweird.f32 %v904_v32  ;;  %v914_v39 = vand.u32 2147483647, %v904_v32 }
 0xf76   :  { %v917_v42 = vor.u32 1.1754944e-38, %v916_v38  ;;  %vm915_vm14 = vcmp.eq.f32.partialorder %v914_v39, 8.507059e+37 }
 0xf7a   :  { %v1437_v33 = vpop.eup %1436 }
 0xf7b   :  { %v906_v34 = vmul.f32 %v1437_v33, %v904_v32  ;;  %vm911_vm11 = vweird.f32 %v1437_v33 }
 0xf7c   :  { %vm912_vm13 = vmor %vm910_vm12, %vm911_vm11  ;;  %vm1215_vm12 = vcmask 253952  }
 0xf7d   :  { %v907_v35 = vsub.f32 1.0, %v906_v34 }
 0xf7f   :  { %v908_v36 = vmul.f32 %v1437_v33, %v907_v35 }
 0xf80   :  { %v991_v58 = vpop.permute.xlu1 %990 }
 0xf81   :  { %v993_v29 = vmul.f32 %v991_v58, %v982_v28  ;;  %v909_v37 = vadd.f32 %v1437_v33, %v908_v36 }
 0xf83   :  { %995 = vrot.lane.b32.xlu0 %v993_v29, %s1522_s4  ;;  %v913_v41 = vsel %vm912_vm13, %v1437_v33, %v909_v37 }
 0xf84   :  { %v918_v46 = vsel %vm915_vm14, %v917_v42, %v913_v41 }
 0xf85   :  { %v921_v55 = vmul.f32 %v918_v46, %v1801_v40 }
 0xfe2   :  { %v924_v43 = vpop.permute.xlu0 %923 }
 0xfe3   :  { %v926_v45 = vmul.f32 %v924_v43, %v918_v46 }
 0xfe5   :  { %928 = vrot.lane.b32.xlu2 %v926_v45, %s1522_s4 }
 0xff5   :  { %v996_v54 = vpop.permute.xlu0 %995 }
 0xff6   :  { %v1818_v59 = vadd.f32 %v996_v54, %v988_v52 }
 0xff8   :  { %1438 = vtanh.f32 %v1818_v59 }
 0xffe   :  { %v1439_v61 = vpop.eup %1438 }
 0xfff   :  { %1001 = vrot.lane.b32.xlu2 %v1439_v61, %s1521_s2 }
0x103f   :  { %v929_v56 = vpop.permute.xlu2 %928 }
0x1040   :  { %v1823_v57 = vadd.f32 %v929_v56, %v921_v55 }
0x1042   :  { %1440 = vtanh.f32 %v1823_v57 }
0x1048   :  { %v1441_v63 = vpop.eup %1440 }
0x1049   :  { %934 = vrot.lane.b32.xlu1 %v1441_v63, %s1521_s2 }
0x1059   :  { %v1002_v44 = vpop.permute.xlu2 %1001 }
0x105a   :  { %v1004_v0 = vmul.f32 %v1002_v44, %v982_v28 }
0x105c   :  { %v1071_v1 = vpack.c.bf16 %v1004_v0, %v1004_v0  ;;  %1006 = vrot.lane.b32.xlu0 %v1004_v0, %s1522_s4 }
0x105e   :  { %v1073_v2 = vrot.slane %v1071_v1, 3 }
0x1060   :  { %1074 = vrot.lane.b32.xlu2 %v1073_v2, %s1522_s4 }
0x10ba   :  { %v1075_v50 = vpop.permute.xlu2 %1074 }
0x10bb   :  { %1317 = vmatmul.msk.bf16.vlgmr.msra.gmra.mxu0 %vm109_vm3, %v1075_v50  ;;  %v935_v40 = vpop.permute.xlu1 %934 }
0x10bc   :  { %v937_v3 = vmul.f32 %v935_v40, %v918_v46  ;;  %v1117_v46 = vrot.slane %v1818_v59, 7 }
0x10be   :  { %v1010_v62 = vrot.slane %v937_v3, 2 }
0x10c0   :  { %1011 = vrot.lane.b32.xlu1 %v1010_v62, %s1521_s2 }
0x10ce   :  { %v1007_v60 = vpop.permute.xlu0 %1006 }
0x1132   :  { %v1012_v4 = vpop.permute.xlu1 %1011 }
0x1133   :  { %v1014_v5 = vsel %vm109_vm3, %v1007_v60, %v1012_v4 }
0x1134   :  { %v1015_v9 = vpack.c.bf16 %v1014_v5, %v1014_v5 }
0x1136   :  { %v1017_v11 = vrot.slane %v1015_v9, 3 }
0x1138   :  { %1315 = vmatmul.msk.bf16.vlgmr.msrb.gmra.mxu3 %vm222_vm8, %v1017_v11  ;;  %v1088_v6 = vpop.f32.mrf.mxu0 }
0x1139   :  { %v1093_v7 = vrot.slane %v1088_v6, 1 }
0x113b   :  { %v1095_v8 = vadd.f32 %v1093_v7, %v1625_v24 }
0x113d   :  { %1442 = vtanh.f32 %v1095_v8  ;;  %v1318_v13 = vmul.f32 -1.442695, %v1095_v8 }
0x113f   :  { %1444 = vpow2.f32 %v1318_v13 }
0x1140   :  { %v1090_v10 = vpop.f32.mrf.mxu0 }
0x1143   :  { %v1443_v12 = vpop.eup %1442 }
0x1144   :  { %1121 = vrot.lane.b32.xlu1 %v1443_v12, %s1521_s2 }
0x1145   :  { %v1445_v14 = vpop.eup %1444 }
0x1146   :  { %v1099_v15 = vadd.f32 1.0, %v1445_v14 }
0x1148   :  { %1446 = vrcp.f32 %v1099_v15  ;;  %v1111_v21 = vand.u32 2147483648, %v1099_v15  ;;  %vm1105_vm0 = vweird.f32 %v1099_v15  ;;  %v1109_v22 = vand.u32 2147483647, %v1099_v15 }
0x114a   :  { %v1112_v26 = vor.u32 1.1754944e-38, %v1111_v21  ;;  %vm1110_vm2 = vcmp.eq.f32.partialorder %v1109_v22, 8.507059e+37 }
0x114e   :  { %v1447_v16 = vpop.eup %1446 }
0x114f   :  { %v1101_v47 = vmul.f32 %v1447_v16, %v1099_v15  ;;  %vm1106_vm15 = vweird.f32 %v1447_v16 }
0x1150   :  { %vm1107_vm1 = vmor %vm1105_vm0, %vm1106_vm15 }
0x1151   :  { %v1102_v17 = vsub.f32 1.0, %v1101_v47 }
0x1153   :  { %v1103_v53 = vmul.f32 %v1447_v16, %v1102_v17 }
0x1155   :  { %v1104_v18 = vadd.f32 %v1447_v16, %v1103_v53 }
0x1157   :  { %v1108_v23 = vsel %vm1107_vm1, %v1447_v16, %v1104_v18 }
0x1158   :  { %v1113_v27 = vsel %vm1110_vm2, %v1112_v26, %v1108_v23 }
0x1159   :  { %v1119_v45 = vmul.f32 %v1117_v46, %v1113_v27 }
0x11b6   :  { %v1122_v25 = vpop.permute.xlu1 %1121 }
0x11b7   :  { %v1124_v28 = vmul.f32 %v1122_v25, %v1113_v27 }
0x11bb   :  { %v1030_v48 = vpop.f32.mrf.mxu3 }
0x11bc   :  { %v1031_v24 = vadd.f32 %v1838_v49, %v1030_v48 }
0x11be   :  { %1448 = vtanh.f32 %v1031_v24  ;;  %v1316_v58 = vmul.f32 -1.442695, %v1031_v24 }
0x11c0   :  { %1450 = vpow2.f32 %v1316_v58 }
0x11c3   :  { %v1032_v19 = vpop.f32.mrf.mxu3 }
0x11c4   :  { %v1449_v20 = vpop.eup %1448 }
0x11c5   :  { %1056 = vrot.lane.b32.xlu0 %v1449_v20, %s1521_s2 }
0x11c6   :  { %v1451_v29 = vpop.eup %1450 }
0x11c7   :  { %v1037_v30 = vadd.f32 1.0, %v1451_v29 }
0x11c9   :  { %1452 = vrcp.f32 %v1037_v30  ;;  %v1049_v36 = vand.u32 2147483648, %v1037_v30  ;;  %vm1043_vm5 = vweird.f32 %v1037_v30  ;;  %v1047_v37 = vand.u32 2147483647, %v1037_v30 }
0x11cb   :  { %v1050_v39 = vor.u32 1.1754944e-38, %v1049_v36  ;;  %vm1048_vm7 = vcmp.eq.f32.partialorder %v1047_v37, 8.507059e+37 }
0x11cd   :  { %1126 = vrot.lane.b32.xlu0 %v1124_v28, %s1522_s4 }
0x11cf   :  { %v1453_v31 = vpop.eup %1452 }
0x11d0   :  { %v1039_v32 = vmul.f32 %v1453_v31, %v1037_v30  ;;  %vm1044_vm4 = vweird.f32 %v1453_v31 }
0x11d1   :  { %vm1045_vm6 = vmor %vm1043_vm5, %vm1044_vm4 }
0x11d2   :  { %v1040_v33 = vsub.f32 1.0, %v1039_v32 }
0x11d4   :  { %v1041_v34 = vmul.f32 %v1453_v31, %v1040_v33 }
0x11d6   :  { %v1042_v35 = vadd.f32 %v1453_v31, %v1041_v34 }
0x11d8   :  { %v1046_v38 = vsel %vm1045_vm6, %v1453_v31, %v1042_v35 }
0x11d9   :  { %v1051_v42 = vsel %vm1048_vm7, %v1050_v39, %v1046_v38 }
0x11da   :  { %v1054_v61 = vmul.f32 %v1051_v42, %v1823_v57 }
0x1237   :  { %v1057_v41 = vpop.permute.xlu0 %1056 }
0x1238   :  { %v1059_v43 = vmul.f32 %v1057_v41, %v1051_v42 }
0x123a   :  { %1061 = vrot.lane.b32.xlu2 %v1059_v43, %s1522_s4 }
0x123f   :  { %v1127_v51 = vpop.permute.xlu0 %1126 }
0x1240   :  { %v1129_v52 = vadd.f32 %v1127_v51, %v1119_v45 }
0x1242   :  { %1454 = vtanh.f32 %v1129_v52 }
0x1248   :  { %v1455_v54 = vpop.eup %1454 }
0x1249   :  { %1132 = vrot.lane.b32.xlu2 %v1455_v54, %s1521_s2 }
0x1294   :  { %v1062_v55 = vpop.permute.xlu2 %1061 }
0x1295   :  { %v1064_v56 = vadd.f32 %v1062_v55, %v1054_v61 }
0x1297   :  { %1456 = vtanh.f32 %v1064_v56 }
0x129d   :  { %v1457_v63 = vpop.eup %1456 }
0x129e   :  { %1067 = vrot.lane.b32.xlu1 %v1457_v63, %s1521_s2 }
0x12a3   :  { %v1133_v44 = vpop.permute.xlu2 %1132 }
0x12a4   :  { %v1135_v0 = vmul.f32 %v1133_v44, %v1113_v27 }
0x12a6   :  { %1137 = vrot.lane.b32.xlu0 %v1135_v0, %s1522_s4 }
0x1310   :  { %v1068_v59 = vpop.permute.xlu1 %1067 }
0x1311   :  { %v1070_v1 = vmul.f32 %v1068_v59, %v1051_v42 }
0x1313   :  { %v1141_v2 = vrot.slane %v1070_v1, 1 }
0x1315   :  { %1142 = vrot.lane.b32.xlu1 %v1141_v2, %s1521_s2 }
0x1318   :  { %v1138_v50 = vpop.permute.xlu0 %1137 }
0x1319   :  { %1205 = vst.msk [vmem:[#allocation2 - $0x7] sm:$0x80] %vm1204_vm9, %v1138_v50 }
0x1387   :  { %v1143_v57 = vpop.permute.xlu1 %1142 }
0x1388   :  { %v1145_v40 = vsel %vm109_vm3, %v1138_v50, %v1143_v57 }
0x1389   :  { %v1146_v3 = vpack.c.bf16 %v1145_v40, %v1145_v40 }
0x138b   :  { %v1148_v62 = vshrl.u32 %v1146_v3, 16 }
0x138d   :  { %v1150_v60 = vrot.slane %v1148_v62, 3 }
0x138f   :  { %1319 = vmatmul.msk.bf16.vlgmr.msra.gmra.mxu1 %vm222_vm8, %v1150_v60 }
0x140c   :  { %v1163_v4 = vpop.f32.mrf.mxu1 }
0x140d   :  { %v1164_v5 = vadd.f32 %v1838_v49, %v1163_v4 }
0x140f   :  { %1458 = vtanh.f32 %v1164_v5  ;;  %v1320_v6 = vmul.f32 -1.442695, %v1164_v5 }
0x1411   :  { %1460 = vpow2.f32 %v1320_v6 }
0x1414   :  { %v1165_v9 = vpop.f32.mrf.mxu1 }
0x1415   :  { %v1459_v11 = vpop.eup %1458 }
0x1416   :  { %1189 = vrot.lane.b32.xlu2 %v1459_v11, %s1521_s2 }
0x1417   :  { %v1461_v7 = vpop.eup %1460 }
0x1418   :  { %v1170_v8 = vadd.f32 1.0, %v1461_v7 }
0x141a   :  { %1462 = vrcp.f32 %v1170_v8  ;;  %v1182_v16 = vand.u32 2147483648, %v1170_v8  ;;  %vm1176_vm8 = vweird.f32 %v1170_v8  ;;  %v1180_v47 = vand.u32 2147483647, %v1170_v8 }
0x141c   :  { %v1183_v48 = vor.u32 1.1754944e-38, %v1182_v16  ;;  %vm1181_vm11 = vcmp.eq.f32.partialorder %v1180_v47, 8.507059e+37 }
0x141e   :  { %1207 = vrot.lane.b32.xlu2 %v1129_v52, %s1523_s6 }
0x1420   :  { %v1463_v10 = vpop.eup %1462 }
0x1421   :  { %v1172_v12 = vmul.f32 %v1463_v10, %v1170_v8  ;;  %vm1177_vm3 = vweird.f32 %v1463_v10 }
0x1422   :  { %vm1178_vm10 = vmor %vm1176_vm8, %vm1177_vm3 }
0x1423   :  { %v1173_v13 = vsub.f32 1.0, %v1172_v12 }
0x1425   :  { %v1174_v14 = vmul.f32 %v1463_v10, %v1173_v13 }
0x1427   :  { %v1175_v15 = vadd.f32 %v1463_v10, %v1174_v14 }
0x1429   :  { %v1179_v17 = vsel %vm1178_vm10, %v1463_v10, %v1175_v15 }
0x142a   :  { %v1184_v24 = vsel %vm1181_vm11, %v1183_v48, %v1179_v17 }
0x142b   :  { %v1187_v19 = vmul.f32 %v1184_v24, %v1064_v56 }
0x1470   :  { %v1190_v49 = vpop.permute.xlu2 %1189 }
0x1471   :  { %v1192_v53 = vmul.f32 %v1190_v49, %v1184_v24 }
0x1473   :  { %1194 = vrot.lane.b32.xlu0 %v1192_v53, %s1522_s4 }
0x1478   :  { %v1208_v18 = vpop.permute.xlu2 %1207 }
0x1479   :  { %1210 = vst.msk [vmem:[#allocation4 - $0x7] sm:$0x80] %vm1204_vm9, %v1208_v18 }
0x14e5   :  { %v1195_v20 = vpop.permute.xlu0 %1194 }
0x14e6   :  { %v1197_v21 = vadd.f32 %v1195_v20, %v1187_v19 }
0x14e8   :  { %1464 = vtanh.f32 %v1197_v21 }
0x14ee   :  { %v1465_v22 = vpop.eup %1464 }
0x14ef   :  { %1200 = vrot.lane.b32.xlu1 %v1465_v22, %s1521_s2 }
0x14f7   :  { %1218 = vrot.lane.b32.xlu1 %v1197_v21, %s1523_s6 }
0x1561   :  { %v1201_v23 = vpop.permute.xlu1 %1200 }
0x1562   :  { %v1203_v25 = vmul.f32 %v1201_v23, %v1184_v24 }
0x1564   :  { %1212 = vrot.lane.b32.xlu0 %v1203_v25, %s1522_s4 }
0x1569   :  { %v1219_v26 = vpop.permute.xlu1 %1218 }
0x156a   :  { %1221 = vst.msk [vmem:[#allocation4 + $0x1] sm:$0x1] %vm1215_vm12, %v1219_v26 }
0x156b   :  { %1243 = dma.vmem_to_hbm [thread:$0]  %s1239_s17, 32, %s1241_s20, [#allocation5]  }
0x15d6   :  { %v1213_v27 = vpop.permute.xlu0 %1212 }
0x15d7   :  { %1216 = vst.msk [vmem:[#allocation2 + $0x1] sm:$0x1] %vm1215_vm12, %v1213_v27 }
0x15d8   :  { %1232 = dma.vmem_to_hbm [thread:$0]  %s1228_s22, 32, %s1230_s25, [#allocation3]  }
0x15d9   :  { %1515 = dma.done.wait [#allocation3], 32  }
0x15da   :  { %1516 = vsyncadd [#allocation3], 4294967264 }
0x15db   :  { %1517 = dma.done.wait [#allocation5], 32  }
0x15dc   :  { %1518 = vsyncadd [#allocation5], 4294967264 }
0x15dd   :  { %1252 = vsyncpa [#allocation3], 1 }
0x15de   :  { %1253 = vsyncpa [#allocation5], 1 }

</bundles_post_ra>
